<compile_context>
chip_gen: v7x
topology: tpu7x:2x2x1
jax: 0.10.0
libtpu: 0.0.40
codegen_flags: <defaults>
</compile_context>

<pallas_src>
import numpy as np
import jax
import jax.numpy as jnp
from jax import lax
from jax.experimental import pallas as pl
from jax.experimental.pallas import tpu as pltpu


# ----------------------------- Pallas kernel --------------------------------

def disc_kernel(ids_ref, ehr_ref, table_ref,
                wi0_ref, bi0_ref, w_hh_ref, b_hh_ref, wi1_ref, bi1_ref,
                we_ref, wo_ref, bo_ref,
                out_ref,
                x_ref, gi_ref, sem):
    B = out_ref.shape[0]
    HP = wo_ref.shape[1]            # per-gate width, padded to a 128-lane multiple
    V = table_ref.shape[0]

    # ---- Phase 1a: start DMA gather of the B live embedding rows (HBM->VMEM).
    # Only GRU-batch row S-1 contributes to out[:, -1, :]; ids were pre-sliced.
    for t in range(B):
        idx = jnp.clip(ids_ref[t], 0, V - 1)   # clamp data-dependent index (no OOB)
        pltpu.make_async_copy(table_ref.at[pl.ds(idx, 1), :],
                              x_ref.at[pl.ds(t, 1), :],
                              sem.at[t]).start()

    # ---- Hoist loop-invariant weight/bias loads off the serial critical path.
    w_hh = w_hh_ref[...]            # (2HP, 6HP) block-diag [Wh0 | Wh1]
    b_hh = b_hh_ref[...]            # (1, 6HP)   [bh0 | bh1]
    wi1 = wi1_ref[...]              # (HP, 3HP)
    bi1 = bi1_ref[...]              # (1, 3HP)
    row_ids = lax.broadcasted_iota(jnp.int32, (B, HP), 0)   # hoisted broadcast

    # ---- Phase 1b: wait for the gathered rows before the input projection.
    for t in range(B):
        pltpu.make_async_copy(table_ref.at[pl.ds(0, 1), :],
                              x_ref.at[pl.ds(t, 1), :],
                              sem.at[t]).wait()

    # ---- Phase 2: hoisted layer-0 input projection, one wide (B,E)@(E,3HP). --
    gi_ref[...] = (jnp.dot(x_ref[...], wi0_ref[...],
                           preferred_element_type=jnp.float32) + bi0_ref[...])

    # ---- Phase 3: serial recurrence over the GRU time axis (= B here). -------
    def gates(gi, gh, h):
        # r and z share one sigmoid over the lane-aligned [0, 2*HP) span.
        rz = jax.nn.sigmoid(gi[:, :2 * HP] + gh[:, :2 * HP])
        r, z = rz[:, :HP], rz[:, HP:]
        n = jnp.tanh(gi[:, 2 * HP:] + r * gh[:, 2 * HP:])
        return (1.0 - z) * n + z * h

    def step(t, carry):
        h1, h2, olast = carry
        hh = jnp.concatenate([h1, h2], axis=1)                         # (1, 2HP)
        # One fused MXU matmul produces both layers' hidden projections.
        gh = jnp.dot(hh, w_hh, preferred_element_type=jnp.float32) + b_hh
        gi0 = gi_ref[pl.ds(t, 1), :]                                   # (1, 3HP)
        h1n = gates(gi0, gh[:, :3 * HP], h1)
        gi1 = jnp.dot(h1n, wi1, preferred_element_type=jnp.float32) + bi1
        h2n = gates(gi1, gh[:, 3 * HP:], h2)
        olast = jnp.where(row_ids == t, h2n, olast)       # carry out[t, S-1, :]
        return (h1n, h2n, olast)

    h0 = jnp.zeros((1, HP), jnp.float32)                  # hidden = None
    olast0 = jnp.zeros((B, HP), jnp.float32)
    _, _, olast = lax.fori_loop(0, B, step, (h0, h0, olast0), unroll=True)

    # ---- Phase 4: out = sigmoid(Linear(tanh(cat(ehrReps, out_last)))) --------
    # N=1 output -> VPU multiply + lane reduce (no near-empty MXU matmuls).
    # Padded lanes: tanh(0)=0 and wo pad=0, so they contribute nothing.
    feat_ehr = jnp.tanh(ehr_ref[...])                                  # (B, 300)
    feat_gru = jnp.tanh(olast)                                         # (B, HP)
    logit = (jnp.sum(feat_ehr * we_ref[...], axis=-1, keepdims=True)
             + jnp.sum(feat_gru * wo_ref[...], axis=-1, keepdims=True)
             + bo_ref[...])                                            # (B, 1)
    out_ref[...] = jax.nn.sigmoid(logit)


# ------------------------------ wrapper --------------------------------------

def discriminator_forward(paths, ehr_reps, params):
    """paths: (B, S) int32, ehr_reps: (B, 300) f32  ->  (B, 1) f32 in [0,1]."""
    B, S = paths.shape
    E = params["embedding"].shape[1]
    H = params["wh0"].shape[-1]
    HP = ((H + 127) // 128) * 128            # lane-aligned per-gate width

    # Only GRU-batch row S-1 contributes to out[:, -1, :] (rows are independent).
    ids = paths[:, S - 1].astype(jnp.int32)                  # (B,)

    pad_c = lambda w: jnp.pad(w, ((0, 0), (0, HP - H)))      # pad gate cols -> HP
    pad_r = lambda w: jnp.pad(w, ((0, HP - w.shape[0]), (0, 0)))   # pad rows -> HP

    def pack_gates(w):   # (3, Din, H) -> (Din, 3*HP), gates [r,z,n] lane-aligned
        return jnp.concatenate([pad_c(w[g]) for g in range(3)], axis=1)

    def pack_bias(b):    # (3, 1, H) -> (1, 3*HP)
        return jnp.concatenate([pad_c(b[g]) for g in range(3)], axis=1)

    wi0 = pack_gates(params["wi0"])                          # (E, 3HP)
    bi0 = pack_bias(params["bi0"])                           # (1, 3HP)
    wh0 = pad_r(pack_gates(params["wh0"]))                   # (HP, 3HP)
    bh0 = pack_bias(params["bh0"])
    wi1 = pad_r(pack_gates(params["wi1"]))                   # (HP, 3HP)
    bi1 = pack_bias(params["bi1"])
    wh1 = pad_r(pack_gates(params["wh1"]))                   # (HP, 3HP)
    bh1 = pack_bias(params["bh1"])

    # Block-diagonal fused hidden->gates weight: [h1|h2] @ w_hh -> [gh0|gh1].
    w_hh = jnp.zeros((2 * HP, 6 * HP), jnp.float32)
    w_hh = w_hh.at[:HP, :3 * HP].set(wh0)
    w_hh = w_hh.at[HP:, 3 * HP:].set(wh1)
    b_hh = jnp.concatenate([bh0, bh1], axis=1)               # (1, 6HP)

    we = params["we"].T                                      # (1, 300)
    wo = jnp.pad(params["wo"].T, ((0, 0), (0, HP - H)))      # (1, HP)
    bo = params["bo"]                                        # (1, 1)

    vspec = pl.BlockSpec(memory_space=pltpu.MemorySpace.VMEM)
    sspec = pl.BlockSpec(memory_space=pltpu.MemorySpace.SMEM)
    aspec = pl.BlockSpec(memory_space=pl.ANY)                # embedding stays in HBM

    return pl.pallas_call(
        disc_kernel,
        out_shape=jax.ShapeDtypeStruct((B, 1), jnp.float32),
        in_specs=[sspec, vspec, aspec] + [vspec] * 9,
        out_specs=vspec,
        scratch_shapes=[
            pltpu.VMEM((B, E), jnp.float32),         # DMA-gathered embedding rows
            pltpu.VMEM((B, 3 * HP), jnp.float32),    # hoisted layer-0 input proj
            pltpu.SemaphoreType.DMA((B,)),           # per-row gather semaphores
        ],
    )(ids, ehr_reps, params["embedding"],
      wi0, bi0, w_hh, b_hh, wi1, bi1, we, wo, bo)


# ------------------------- pure-JAX reference --------------------------------

def reference_forward(paths, ehr_reps, params):
    """Full-fidelity reference: runs all S GRU-batch rows, unpacked weights."""
    emb = params["embedding"][paths]
    B, S, E = emb.shape
    H = params["wh0"].shape[-1]

    def cell(x, h, wi, wh, bi, bh):
        gi = [jnp.dot(x, wi[g], preferred_element_type=jnp.float32) + bi[g] for g in range(3)]
        gh = [jnp.dot(h, wh[g], preferred_element_type=jnp.float32) + bh[g] for g in range(3)]
        r = jax.nn.sigmoid(gi[0] + gh[0])
        z = jax.nn.sigmoid(gi[1] + gh[1])
        n = jnp.tanh(gi[2] + r * gh[2])
        return (1.0 - z) * n + z * h

    h1 = jnp.zeros((S, H), jnp.float32)
    h2 = jnp.zeros((S, H), jnp.float32)
    olast = []
    for t in range(B):
        h1 = cell(emb[t], h1, params["wi0"], params["wh0"], params["bi0"], params["bh0"])
        h2 = cell(h1, h2, params["wi1"], params["wh1"], params["bi1"], params["bh1"])
        olast.append(h2[S - 1])
    olast = jnp.stack(olast)                                  # (B, H)
    feat = jnp.tanh(jnp.concatenate([ehr_reps, olast], axis=1))
    w_full = jnp.concatenate([params["we"], params["wo"]], axis=0)  # (300+H, 1)
    logit = jnp.dot(feat, w_full, preferred_element_type=jnp.float32) + params["bo"]
    return jax.nn.sigmoid(logit)


# --------------------------------- main ---------------------------------------

def make_params(key, vocab, E, H, ehr_dim):
    ks = jax.random.split(key, 16)
    u = lambda k, shape, s: jax.random.uniform(k, shape, jnp.float32, -s, s)
    std = 1.0 / np.sqrt(H)
    return {
        "embedding": jax.random.normal(ks[0], (vocab, E), jnp.float32) * 0.1,
        # GRU layer 0 (input E -> H), gates stacked [r, z, n]
        "wi0": u(ks[1], (3, E, H), std), "wh0": u(ks[2], (3, H, H), std),
        "bi0": u(ks[3], (3, 1, H), std), "bh0": u(ks[4], (3, 1, H), std),
        # GRU layer 1 (input H -> H)
        "wi1": u(ks[5], (3, H, H), std), "wh1": u(ks[6], (3, H, H), std),
        "bi1": u(ks[7], (3, 1, H), std), "bh1": u(ks[8], (3, 1, H), std),
        # hidden2out: Linear(H + 300, 1), split into ehr-part (first 300) and GRU-part
        "we": u(ks[9], (ehr_dim, 1), 1.0 / np.sqrt(H + ehr_dim)),
        "wo": u(ks[10], (H, 1), 1.0 / np.sqrt(H + ehr_dim)),
        "bo": u(ks[11], (1, 1), 1.0 / np.sqrt(H + ehr_dim)),
    }


if __name__ == "__main__":
    B, S = 2, 8            # batch_size x seq_len paths
    E, H = 32, 32          # node_embedding_size, d_hidden_size
    VOCAB = 50             # len(args.node2id)
    EHR = 300              # ehrEncoder output width (hidden2out expects H + 300)

    key = jax.random.PRNGKey(0)
    kp, kpaths, kehr = jax.random.split(key, 3)
    params = make_params(kp, VOCAB, E, H, EHR)

    paths = jax.random.randint(kpaths, (B, S), 0, VOCAB, dtype=jnp.int32)
    ehr_reps = jax.random.normal(kehr, (B, EHR), jnp.float32)

    out = discriminator_forward(paths, ehr_reps, params)
    out = jax.block_until_ready(out)

    ref = jax.block_until_ready(reference_forward(paths, ehr_reps, params))
    np.testing.assert_allclose(np.asarray(out), np.asarray(ref), rtol=2e-3, atol=2e-3)
    assert out.shape == (B, 1)

    print("KERNEL_OK")
</pallas_src>

<mosaic_0001>
module attributes {stable_mosaic.version = 11 : i64} {
  func.func @disc_kernel(%arg0: memref<2xi32, #tpu.memory_space<smem>>, %arg1: memref<2x300xf32, #tpu.memory_space<vmem>>, %arg2: memref<50x32xf32, #tpu.memory_space<any>>, %arg3: memref<32x384xf32, #tpu.memory_space<vmem>>, %arg4: memref<1x384xf32, #tpu.memory_space<vmem>>, %arg5: memref<256x768xf32, #tpu.memory_space<vmem>>, %arg6: memref<1x768xf32, #tpu.memory_space<vmem>>, %arg7: memref<128x384xf32, #tpu.memory_space<vmem>>, %arg8: memref<1x384xf32, #tpu.memory_space<vmem>>, %arg9: memref<1x300xf32, #tpu.memory_space<vmem>>, %arg10: memref<1x128xf32, #tpu.memory_space<vmem>>, %arg11: memref<1x1xf32, #tpu.memory_space<vmem>>, %arg12: memref<2x1xf32, #tpu.memory_space<vmem>>, %arg13: memref<2x32xf32, #tpu.memory_space<vmem>>, %arg14: memref<2x384xf32, #tpu.memory_space<vmem>>, %arg15: memref<2x!tpu.dma_semaphore, #tpu.memory_space<semaphore_mem>>) attributes {dimension_semantics = [], scalar_prefetch = 0 : i64, scratch_operands = 3 : i64, tpu.core_type = #tpu.core_type<tc>} {
    %c0 = arith.constant 0 : index
    %0 = memref.load %arg0[%c0] : memref<2xi32, #tpu.memory_space<smem>>
    %c0_i32 = arith.constant 0 : i32
    %c49_i32 = arith.constant 49 : i32
    %1 = arith.maxsi %c0_i32, %0 : i32
    %2 = arith.minsi %c49_i32, %1 : i32
    %c0_i32_0 = arith.constant 0 : i32
    %c0_i32_1 = arith.constant 0 : i32
    %3 = tpu.memref_slice %arg2[%2, %c0_i32_1] : memref<50x32xf32, #tpu.memory_space<any>> -> memref<1x32xf32, #tpu.memory_space<any>>
    %c0_i32_2 = arith.constant 0 : i32
    %c0_i32_3 = arith.constant 0 : i32
    %4 = tpu.memref_slice %arg13[%c0_i32_2, %c0_i32_3] : memref<2x32xf32, #tpu.memory_space<vmem>> -> memref<1x32xf32, #tpu.memory_space<vmem>>
    %5 = tpu.memref_slice %arg15[%c0_i32_0] : memref<2x!tpu.dma_semaphore, #tpu.memory_space<semaphore_mem>> -> memref<1x!tpu.dma_semaphore, #tpu.memory_space<semaphore_mem>>
    %6 = tpu.memref_squeeze %5 : memref<1x!tpu.dma_semaphore, #tpu.memory_space<semaphore_mem>> -> memref<!tpu.dma_semaphore, #tpu.memory_space<semaphore_mem>>
    tpu.enqueue_dma source(%3 : memref<1x32xf32, #tpu.memory_space<any>>) target(%4 : memref<1x32xf32, #tpu.memory_space<vmem>>) target_semaphore(%6 : memref<!tpu.dma_semaphore, #tpu.memory_space<semaphore_mem>>)
    %c1 = arith.constant 1 : index
    %7 = memref.load %arg0[%c1] : memref<2xi32, #tpu.memory_space<smem>>
    %c0_i32_4 = arith.constant 0 : i32
    %c49_i32_5 = arith.constant 49 : i32
    %8 = arith.maxsi %c0_i32_4, %7 : i32
    %9 = arith.minsi %c49_i32_5, %8 : i32
    %c1_i32 = arith.constant 1 : i32
    %c0_i32_6 = arith.constant 0 : i32
    %10 = tpu.memref_slice %arg2[%9, %c0_i32_6] : memref<50x32xf32, #tpu.memory_space<any>> -> memref<1x32xf32, #tpu.memory_space<any>>
    %c1_i32_7 = arith.constant 1 : i32
    %c0_i32_8 = arith.constant 0 : i32
    %11 = tpu.memref_slice %arg13[%c1_i32_7, %c0_i32_8] : memref<2x32xf32, #tpu.memory_space<vmem>> -> memref<1x32xf32, #tpu.memory_space<vmem>>
    %12 = tpu.memref_slice %arg15[%c1_i32] : memref<2x!tpu.dma_semaphore, #tpu.memory_space<semaphore_mem>> -> memref<1x!tpu.dma_semaphore, #tpu.memory_space<semaphore_mem>>
    %13 = tpu.memref_squeeze %12 : memref<1x!tpu.dma_semaphore, #tpu.memory_space<semaphore_mem>> -> memref<!tpu.dma_semaphore, #tpu.memory_space<semaphore_mem>>
    tpu.enqueue_dma source(%10 : memref<1x32xf32, #tpu.memory_space<any>>) target(%11 : memref<1x32xf32, #tpu.memory_space<vmem>>) target_semaphore(%13 : memref<!tpu.dma_semaphore, #tpu.memory_space<semaphore_mem>>)
    %c0_9 = arith.constant 0 : index
    %c0_10 = arith.constant 0 : index
    %14 = vector.load %arg5[%c0_9, %c0_10] : memref<256x768xf32, #tpu.memory_space<vmem>>, vector<256x768xf32>
    %c0_11 = arith.constant 0 : index
    %c0_12 = arith.constant 0 : index
    %15 = vector.load %arg6[%c0_11, %c0_12] : memref<1x768xf32, #tpu.memory_space<vmem>>, vector<1x768xf32>
    %c0_13 = arith.constant 0 : index
    %c0_14 = arith.constant 0 : index
    %16 = vector.load %arg7[%c0_13, %c0_14] : memref<128x384xf32, #tpu.memory_space<vmem>>, vector<128x384xf32>
    %c0_15 = arith.constant 0 : index
    %c0_16 = arith.constant 0 : index
    %17 = vector.load %arg8[%c0_15, %c0_16] : memref<1x384xf32, #tpu.memory_space<vmem>>, vector<1x384xf32>
    %18 = tpu.iota {dimensions = array<i32: 0>} : vector<2x128xi32>
    %c0_i32_17 = arith.constant 0 : i32
    %c0_i32_18 = arith.constant 0 : i32
    %c0_i32_19 = arith.constant 0 : i32
    %19 = tpu.memref_slice %arg2[%c0_i32_18, %c0_i32_19] : memref<50x32xf32, #tpu.memory_space<any>> -> memref<1x32xf32, #tpu.memory_space<any>>
    %c0_i32_20 = arith.constant 0 : i32
    %c0_i32_21 = arith.constant 0 : i32
    %20 = tpu.memref_slice %arg13[%c0_i32_20, %c0_i32_21] : memref<2x32xf32, #tpu.memory_space<vmem>> -> memref<1x32xf32, #tpu.memory_space<vmem>>
    %21 = tpu.memref_slice %arg15[%c0_i32_17] : memref<2x!tpu.dma_semaphore, #tpu.memory_space<semaphore_mem>> -> memref<1x!tpu.dma_semaphore, #tpu.memory_space<semaphore_mem>>
    %22 = tpu.memref_squeeze %21 : memref<1x!tpu.dma_semaphore, #tpu.memory_space<semaphore_mem>> -> memref<!tpu.dma_semaphore, #tpu.memory_space<semaphore_mem>>
    tpu.wait_dma2 semaphore(%22 : memref<!tpu.dma_semaphore, #tpu.memory_space<semaphore_mem>>) src(%19 : memref<1x32xf32, #tpu.memory_space<any>>) dst(%20 : memref<1x32xf32, #tpu.memory_space<vmem>>)
    %c1_i32_22 = arith.constant 1 : i32
    %c0_i32_23 = arith.constant 0 : i32
    %c0_i32_24 = arith.constant 0 : i32
    %23 = tpu.memref_slice %arg2[%c0_i32_23, %c0_i32_24] : memref<50x32xf32, #tpu.memory_space<any>> -> memref<1x32xf32, #tpu.memory_space<any>>
    %c1_i32_25 = arith.constant 1 : i32
    %c0_i32_26 = arith.constant 0 : i32
    %24 = tpu.memref_slice %arg13[%c1_i32_25, %c0_i32_26] : memref<2x32xf32, #tpu.memory_space<vmem>> -> memref<1x32xf32, #tpu.memory_space<vmem>>
    %25 = tpu.memref_slice %arg15[%c1_i32_22] : memref<2x!tpu.dma_semaphore, #tpu.memory_space<semaphore_mem>> -> memref<1x!tpu.dma_semaphore, #tpu.memory_space<semaphore_mem>>
    %26 = tpu.memref_squeeze %25 : memref<1x!tpu.dma_semaphore, #tpu.memory_space<semaphore_mem>> -> memref<!tpu.dma_semaphore, #tpu.memory_space<semaphore_mem>>
    tpu.wait_dma2 semaphore(%26 : memref<!tpu.dma_semaphore, #tpu.memory_space<semaphore_mem>>) src(%23 : memref<1x32xf32, #tpu.memory_space<any>>) dst(%24 : memref<1x32xf32, #tpu.memory_space<vmem>>)
    %c0_27 = arith.constant 0 : index
    %c0_28 = arith.constant 0 : index
    %27 = vector.load %arg13[%c0_27, %c0_28] : memref<2x32xf32, #tpu.memory_space<vmem>>, vector<2x32xf32>
    %c0_29 = arith.constant 0 : index
    %c0_30 = arith.constant 0 : index
    %28 = vector.load %arg3[%c0_29, %c0_30] : memref<32x384xf32, #tpu.memory_space<vmem>>, vector<32x384xf32>
    %cst = arith.constant dense<0.000000e+00> : vector<2x384xf32>
    %29 = tpu.matmul %27, %28, %cst {dimension_numbers = #tpu.dot_dimension_numbers<[1], [0], [0], [1], [0, 0, 1, 1], [], []>} : vector<2x32xf32>, vector<32x384xf32>, vector<2x384xf32> -> vector<2x384xf32>
    %c0_31 = arith.constant 0 : index
    %c0_32 = arith.constant 0 : index
    %30 = vector.load %arg4[%c0_31, %c0_32] : memref<1x384xf32, #tpu.memory_space<vmem>>, vector<1x384xf32>
    %31 = vector.broadcast %30 : vector<1x384xf32> to vector<2x384xf32>
    %32 = arith.addf %29, %31 : vector<2x384xf32>
    %c0_33 = arith.constant 0 : index
    %c0_34 = arith.constant 0 : index
    %33 = vector.load %arg14[%c0_33, %c0_34] : memref<2x384xf32, #tpu.memory_space<vmem>>, vector<2x384xf32>
    tpu.vector_store %arg14[%c0_33, %c0_34], %32 {strides = array<i32>} : memref<2x384xf32, #tpu.memory_space<vmem>>, vector<2x384xf32>,
    %cst_35 = arith.constant 0.000000e+00 : f32
    %34 = vector.broadcast %cst_35 : f32 to vector<1x128xf32>
    %cst_36 = arith.constant 0.000000e+00 : f32
    %35 = vector.broadcast %cst_36 : f32 to vector<2x128xf32>
    %c0_i32_37 = arith.constant 0 : i32
    %36 = tpu.concatenate %34, %34 in 1 : vector<1x128xf32>, vector<1x128xf32> -> vector<1x256xf32>
    %cst_38 = arith.constant dense<0.000000e+00> : vector<1x768xf32>
    %37 = tpu.matmul %36, %14, %cst_38 {dimension_numbers = #tpu.dot_dimension_numbers<[1], [0], [0], [1], [0, 0, 1, 1], [], []>} : vector<1x256xf32>, vector<256x768xf32>, vector<1x768xf32> -> vector<1x768xf32>
    %38 = arith.addf %37, %15 : vector<1x768xf32>
    %39 = arith.index_cast %c0_i32_37 : i32 to index
    %c0_39 = arith.constant 0 : index
    %40 = vector.load %arg14[%39, %c0_39] : memref<2x384xf32, #tpu.memory_space<vmem>>, vector<1x384xf32>
    %41 = vector.extract_strided_slice %38 {offsets = [0, 0], sizes = [1, 384], strides = [1, 1]} : vector<1x768xf32> to vector<1x384xf32>
    %42 = vector.extract_strided_slice %40 {offsets = [0, 0], sizes = [1, 256], strides = [1, 1]} : vector<1x384xf32> to vector<1x256xf32>
    %43 = vector.extract_strided_slice %41 {offsets = [0, 0], sizes = [1, 256], strides = [1, 1]} : vector<1x384xf32> to vector<1x256xf32>
    %44 = arith.addf %42, %43 : vector<1x256xf32>
    %45 = arith.negf %44 : vector<1x256xf32>
    %46 = math.exp %45 : vector<1x256xf32>
    %cst_40 = arith.constant 1.000000e+00 : f32
    %47 = vector.broadcast %cst_40 : f32 to vector<1x256xf32>
    %48 = arith.addf %47, %46 : vector<1x256xf32>
    %49 = arith.divf %47, %48 : vector<1x256xf32>
    %50 = vector.extract_strided_slice %49 {offsets = [0, 0], sizes = [1, 128], strides = [1, 1]} : vector<1x256xf32> to vector<1x128xf32>
    %51 = vector.extract_strided_slice %49 {offsets = [0, 128], sizes = [1, 128], strides = [1, 1]} : vector<1x256xf32> to vector<1x128xf32>
    %52 = vector.extract_strided_slice %40 {offsets = [0, 256], sizes = [1, 128], strides = [1, 1]} : vector<1x384xf32> to vector<1x128xf32>
    %53 = vector.extract_strided_slice %41 {offsets = [0, 256], sizes = [1, 128], strides = [1, 1]} : vector<1x384xf32> to vector<1x128xf32>
    %54 = arith.mulf %50, %53 : vector<1x128xf32>
    %55 = arith.addf %52, %54 : vector<1x128xf32>
    %56 = math.tanh %55 : vector<1x128xf32>
    %cst_41 = arith.constant 1.000000e+00 : f32
    %57 = vector.broadcast %cst_41 : f32 to vector<1x128xf32>
    %58 = arith.subf %57, %51 : vector<1x128xf32>
    %59 = arith.mulf %58, %56 : vector<1x128xf32>
    %60 = arith.mulf %51, %34 : vector<1x128xf32>
    %61 = arith.addf %59, %60 : vector<1x128xf32>
    %cst_42 = arith.constant dense<0.000000e+00> : vector<1x384xf32>
    %62 = tpu.matmul %61, %16, %cst_42 {dimension_numbers = #tpu.dot_dimension_numbers<[1], [0], [0], [1], [0, 0, 1, 1], [], []>} : vector<1x128xf32>, vector<128x384xf32>, vector<1x384xf32> -> vector<1x384xf32>
    %63 = arith.addf %62, %17 : vector<1x384xf32>
    %64 = vector.extract_strided_slice %38 {offsets = [0, 384], sizes = [1, 384], strides = [1, 1]} : vector<1x768xf32> to vector<1x384xf32>
    %65 = vector.extract_strided_slice %63 {offsets = [0, 0], sizes = [1, 256], strides = [1, 1]} : vector<1x384xf32> to vector<1x256xf32>
    %66 = vector.extract_strided_slice %64 {offsets = [0, 0], sizes = [1, 256], strides = [1, 1]} : vector<1x384xf32> to vector<1x256xf32>
    %67 = arith.addf %65, %66 : vector<1x256xf32>
    %68 = arith.negf %67 : vector<1x256xf32>
    %69 = math.exp %68 : vector<1x256xf32>
    %cst_43 = arith.constant 1.000000e+00 : f32
    %70 = vector.broadcast %cst_43 : f32 to vector<1x256xf32>
    %71 = arith.addf %70, %69 : vector<1x256xf32>
    %72 = arith.divf %70, %71 : vector<1x256xf32>
    %73 = vector.extract_strided_slice %72 {offsets = [0, 0], sizes = [1, 128], strides = [1, 1]} : vector<1x256xf32> to vector<1x128xf32>
    %74 = vector.extract_strided_slice %72 {offsets = [0, 128], sizes = [1, 128], strides = [1, 1]} : vector<1x256xf32> to vector<1x128xf32>
    %75 = vector.extract_strided_slice %63 {offsets = [0, 256], sizes = [1, 128], strides = [1, 1]} : vector<1x384xf32> to vector<1x128xf32>
    %76 = vector.extract_strided_slice %64 {offsets = [0, 256], sizes = [1, 128], strides = [1, 1]} : vector<1x384xf32> to vector<1x128xf32>
    %77 = arith.mulf %73, %76 : vector<1x128xf32>
    %78 = arith.addf %75, %77 : vector<1x128xf32>
    %79 = math.tanh %78 : vector<1x128xf32>
    %cst_44 = arith.constant 1.000000e+00 : f32
    %80 = vector.broadcast %cst_44 : f32 to vector<1x128xf32>
    %81 = arith.subf %80, %74 : vector<1x128xf32>
    %82 = arith.mulf %81, %79 : vector<1x128xf32>
    %83 = arith.mulf %74, %34 : vector<1x128xf32>
    %84 = arith.addf %82, %83 : vector<1x128xf32>
    %85 = vector.broadcast %c0_i32_37 : i32 to vector<2x128xi32>
    %86 = arith.cmpi eq, %18, %85 : vector<2x128xi32>
    %87 = vector.shape_cast %84 : vector<1x128xf32> to vector<1x128xf32>
    %88 = vector.broadcast %87 : vector<1x128xf32> to vector<2x128xf32>
    %89 = arith.select %86, %88, %35 : vector<2x128xi1>, vector<2x128xf32>
    %c1_i32_45 = arith.constant 1 : i32
    %90 = tpu.concatenate %61, %84 in 1 : vector<1x128xf32>, vector<1x128xf32> -> vector<1x256xf32>
    %cst_46 = arith.constant dense<0.000000e+00> : vector<1x768xf32>
    %91 = tpu.matmul %90, %14, %cst_46 {dimension_numbers = #tpu.dot_dimension_numbers<[1], [0], [0], [1], [0, 0, 1, 1], [], []>} : vector<1x256xf32>, vector<256x768xf32>, vector<1x768xf32> -> vector<1x768xf32>
    %92 = arith.addf %91, %15 : vector<1x768xf32>
    %93 = arith.index_cast %c1_i32_45 : i32 to index
    %c0_47 = arith.constant 0 : index
    %94 = vector.load %arg14[%93, %c0_47] : memref<2x384xf32, #tpu.memory_space<vmem>>, vector<1x384xf32>
    %95 = vector.extract_strided_slice %92 {offsets = [0, 0], sizes = [1, 384], strides = [1, 1]} : vector<1x768xf32> to vector<1x384xf32>
    %96 = vector.extract_strided_slice %94 {offsets = [0, 0], sizes = [1, 256], strides = [1, 1]} : vector<1x384xf32> to vector<1x256xf32>
    %97 = vector.extract_strided_slice %95 {offsets = [0, 0], sizes = [1, 256], strides = [1, 1]} : vector<1x384xf32> to vector<1x256xf32>
    %98 = arith.addf %96, %97 : vector<1x256xf32>
    %99 = arith.negf %98 : vector<1x256xf32>
    %100 = math.exp %99 : vector<1x256xf32>
    %cst_48 = arith.constant 1.000000e+00 : f32
    %101 = vector.broadcast %cst_48 : f32 to vector<1x256xf32>
    %102 = arith.addf %101, %100 : vector<1x256xf32>
    %103 = arith.divf %101, %102 : vector<1x256xf32>
    %104 = vector.extract_strided_slice %103 {offsets = [0, 0], sizes = [1, 128], strides = [1, 1]} : vector<1x256xf32> to vector<1x128xf32>
    %105 = vector.extract_strided_slice %103 {offsets = [0, 128], sizes = [1, 128], strides = [1, 1]} : vector<1x256xf32> to vector<1x128xf32>
    %106 = vector.extract_strided_slice %94 {offsets = [0, 256], sizes = [1, 128], strides = [1, 1]} : vector<1x384xf32> to vector<1x128xf32>
    %107 = vector.extract_strided_slice %95 {offsets = [0, 256], sizes = [1, 128], strides = [1, 1]} : vector<1x384xf32> to vector<1x128xf32>
    %108 = arith.mulf %104, %107 : vector<1x128xf32>
    %109 = arith.addf %106, %108 : vector<1x128xf32>
    %110 = math.tanh %109 : vector<1x128xf32>
    %cst_49 = arith.constant 1.000000e+00 : f32
    %111 = vector.broadcast %cst_49 : f32 to vector<1x128xf32>
    %112 = arith.subf %111, %105 : vector<1x128xf32>
    %113 = arith.mulf %112, %110 : vector<1x128xf32>
    %114 = arith.mulf %105, %61 : vector<1x128xf32>
    %115 = arith.addf %113, %114 : vector<1x128xf32>
    %cst_50 = arith.constant dense<0.000000e+00> : vector<1x384xf32>
    %116 = tpu.matmul %115, %16, %cst_50 {dimension_numbers = #tpu.dot_dimension_numbers<[1], [0], [0], [1], [0, 0, 1, 1], [], []>} : vector<1x128xf32>, vector<128x384xf32>, vector<1x384xf32> -> vector<1x384xf32>
    %117 = arith.addf %116, %17 : vector<1x384xf32>
    %118 = vector.extract_strided_slice %92 {offsets = [0, 384], sizes = [1, 384], strides = [1, 1]} : vector<1x768xf32> to vector<1x384xf32>
    %119 = vector.extract_strided_slice %117 {offsets = [0, 0], sizes = [1, 256], strides = [1, 1]} : vector<1x384xf32> to vector<1x256xf32>
    %120 = vector.extract_strided_slice %118 {offsets = [0, 0], sizes = [1, 256], strides = [1, 1]} : vector<1x384xf32> to vector<1x256xf32>
    %121 = arith.addf %119, %120 : vector<1x256xf32>
    %122 = arith.negf %121 : vector<1x256xf32>
    %123 = math.exp %122 : vector<1x256xf32>
    %cst_51 = arith.constant 1.000000e+00 : f32
    %124 = vector.broadcast %cst_51 : f32 to vector<1x256xf32>
    %125 = arith.addf %124, %123 : vector<1x256xf32>
    %126 = arith.divf %124, %125 : vector<1x256xf32>
    %127 = vector.extract_strided_slice %126 {offsets = [0, 0], sizes = [1, 128], strides = [1, 1]} : vector<1x256xf32> to vector<1x128xf32>
    %128 = vector.extract_strided_slice %126 {offsets = [0, 128], sizes = [1, 128], strides = [1, 1]} : vector<1x256xf32> to vector<1x128xf32>
    %129 = vector.extract_strided_slice %117 {offsets = [0, 256], sizes = [1, 128], strides = [1, 1]} : vector<1x384xf32> to vector<1x128xf32>
    %130 = vector.extract_strided_slice %118 {offsets = [0, 256], sizes = [1, 128], strides = [1, 1]} : vector<1x384xf32> to vector<1x128xf32>
    %131 = arith.mulf %127, %130 : vector<1x128xf32>
    %132 = arith.addf %129, %131 : vector<1x128xf32>
    %133 = math.tanh %132 : vector<1x128xf32>
    %cst_52 = arith.constant 1.000000e+00 : f32
    %134 = vector.broadcast %cst_52 : f32 to vector<1x128xf32>
    %135 = arith.subf %134, %128 : vector<1x128xf32>
    %136 = arith.mulf %135, %133 : vector<1x128xf32>
    %137 = arith.mulf %128, %84 : vector<1x128xf32>
    %138 = arith.addf %136, %137 : vector<1x128xf32>
    %139 = vector.broadcast %c1_i32_45 : i32 to vector<2x128xi32>
    %140 = arith.cmpi eq, %18, %139 : vector<2x128xi32>
    %141 = vector.shape_cast %138 : vector<1x128xf32> to vector<1x128xf32>
    %142 = vector.broadcast %141 : vector<1x128xf32> to vector<2x128xf32>
    %143 = arith.select %140, %142, %89 : vector<2x128xi1>, vector<2x128xf32>
    %c2_i32 = arith.constant 2 : i32
    %c0_53 = arith.constant 0 : index
    %c0_54 = arith.constant 0 : index
    %144 = vector.load %arg1[%c0_53, %c0_54] : memref<2x300xf32, #tpu.memory_space<vmem>>, vector<2x300xf32>
    %145 = math.tanh %144 : vector<2x300xf32>
    %146 = math.tanh %143 : vector<2x128xf32>
    %c0_55 = arith.constant 0 : index
    %c0_56 = arith.constant 0 : index
    %147 = vector.load %arg9[%c0_55, %c0_56] : memref<1x300xf32, #tpu.memory_space<vmem>>, vector<1x300xf32>
    %148 = vector.broadcast %147 : vector<1x300xf32> to vector<2x300xf32>
    %149 = arith.mulf %145, %148 : vector<2x300xf32>
    %cst_57 = arith.constant dense<0.000000e+00> : vector<2xf32>
    %150 = vector.multi_reduction <add>, %149, %cst_57 [1] : vector<2x300xf32> to vector<2xf32>
    %151 = vector.shape_cast %150 : vector<2xf32> to vector<2x1xf32>
    %c0_58 = arith.constant 0 : index
    %c0_59 = arith.constant 0 : index
    %152 = vector.load %arg10[%c0_58, %c0_59] : memref<1x128xf32, #tpu.memory_space<vmem>>, vector<1x128xf32>
    %153 = vector.broadcast %152 : vector<1x128xf32> to vector<2x128xf32>
    %154 = arith.mulf %146, %153 : vector<2x128xf32>
    %cst_60 = arith.constant dense<0.000000e+00> : vector<2xf32>
    %155 = vector.multi_reduction <add>, %154, %cst_60 [1] : vector<2x128xf32> to vector<2xf32>
    %156 = vector.shape_cast %155 : vector<2xf32> to vector<2x1xf32>
    %157 = arith.addf %151, %156 : vector<2x1xf32>
    %c0_61 = arith.constant 0 : index
    %c0_62 = arith.constant 0 : index
    %158 = vector.load %arg11[%c0_61, %c0_62] : memref<1x1xf32, #tpu.memory_space<vmem>>, vector<1x1xf32>
    %159 = vector.broadcast %158 : vector<1x1xf32> to vector<2x1xf32>
    %160 = arith.addf %157, %159 : vector<2x1xf32>
    %161 = arith.negf %160 : vector<2x1xf32>
    %162 = math.exp %161 : vector<2x1xf32>
    %cst_63 = arith.constant 1.000000e+00 : f32
    %163 = vector.broadcast %cst_63 : f32 to vector<2x1xf32>
    %164 = arith.addf %163, %162 : vector<2x1xf32>
    %165 = arith.divf %163, %164 : vector<2x1xf32>
    %c0_64 = arith.constant 0 : index
    %c0_65 = arith.constant 0 : index
    %166 = vector.load %arg12[%c0_64, %c0_65] : memref<2x1xf32, #tpu.memory_space<vmem>>, vector<2x1xf32>
    tpu.vector_store %arg12[%c0_64, %c0_65], %165 {strides = array<i32>} : memref<2x1xf32, #tpu.memory_space<vmem>>, vector<2x1xf32>,
    return
  }
}

</mosaic_0001>

<bundles_post_ra>
// kernel: tpu_custom_call.1
= control target key start
LH: loop header
LB: loop body
LE: loop exit
PB: predicated region body
PF: predicated region fallthrough
CT: control target
= control target key end

     0   :  { %s4006_s0 = inlined_call_operand.hbm [shape: s32[2], index: 0, kind: input, shape index: {}]   ;;  %s4007_s1 = inlined_call_operand.vmem [shape: f32[2,300], index: 1, kind: input, shape index: {}]   ;;  %s4008_s2 = inlined_call_operand.vmem [shape: f32[50,32], index: 2, kind: input, shape index: {}]   ;;  %s4009_s3 = inlined_call_operand.vmem [shape: f32[32,384], index: 3, kind: input, shape index: {}]   ;;  %s4010_s4 = inlined_call_operand.hbm [shape: f32[1,384], index: 4, kind: input, shape index: {}]   ;;  %s4011_s5 = inlined_call_operand.hbm [shape: f32[256,768], index: 5, kind: input, shape index: {}]   ;;  %s4012_s6 = inlined_call_operand.vmem [shape: f32[1,768], index: 6, kind: input, shape index: {}]   ;;  %s4013_s7 = inlined_call_operand.hbm [shape: f32[128,384], index: 7, kind: input, shape index: {}]   ;;  %s4014_s8 = inlined_call_operand.vmem [shape: f32[1,384], index: 8, kind: input, shape index: {}]   ;;  %s4015_s9 = inlined_call_operand.vmem [shape: f32[1,300], index: 9, kind: input, shape index: {}]   ;;  %s4016_s10 = inlined_call_operand.vmem [shape: f32[1,128], index: 10, kind: input, shape index: {}]   ;;  %s4017_s11 = inlined_call_operand.<no memory space> [shape: f32[1,1], index: 11, kind: input, shape index: {}]   ;;  %s4018_s12 = inlined_call_operand.vmem [shape: f32[2,1], index: 12, kind: output, shape index: {}]  }
   0x1   :  { %v17_v0 = vstv %s4017_s11 }
   0x2   :  { %18 = vst [vmem:[#allocation5] sm:$0x1] %v17_v0 }
   0x3   :  { %19 = vsyncpa [#allocation8], 0 }
   0x4   :  { %20 = vsyncpa [#allocation7], 0 }
   0x5   :  { %21 = vsyncpa [#allocation11], 0  ;;  %s2458_s23 = smov [#allocation10]   ;;  %s2372_s27 = scalar_lea.hbm %s4011_s5, 24576 }
   0x6   :  { %s49_s24 = sshll.u32 %s2458_s23, 4  ;;  %p2373_p0 = scmp.ne.s32.totalorder %s4011_s5, %s2372_s27  ;;  %s50_s24 = int_to_ptr.vmem [resolvable:$true] %s49_s24 }
   0x7   :  { %p2376_p1 = scmp.lt.u32.totalorder %s2372_s27, %s4011_s5 }
   0x9   :  { %p2378_p2 = pnand %p2376_p1, %p2373_p0 }
   0xb   :  { %2381 = shalt.err (!%p2378_p2)
}
   0xc   :  { %s2382_s11 = scalar_lea.vmem %s50_s24, 24576  ;;  %p2387_p4 = scmp.lt.s32.totalorder %s50_s24, %s50_s24 }
   0xd   :  { %p2383_p3 = scmp.ne.s32.totalorder %s50_s24, %s2382_s11  ;;  %p2388_p5 = scmp.lt.s32.totalorder %s2382_s11, %s2382_s11 }
   0xf   :  { %p2389_p6 = por %p2388_p5, %p2387_p4 }
  0x11   :  { %p2390_p7 = pnand %p2389_p6, %p2383_p3 }
  0x13   :  { %2393 = shalt.err (!%p2390_p7)
}
  0x14   :  { %s2459_s14 = smov 768   ;;  %s2460_s15 = smov 48  }
  0x15   :  { %55 = dma.hbm_to_vmem [thread:$0]  %s4011_s5, 24576, %s50_s24, [#allocation11], %s2459_s14, %s2459_s14, %s2460_s15  }
  0x16   :  { %s2394_s20 = scalar_lea.hbm %s4006_s0, 16 }
  0x17   :  { %p2395_p8 = scmp.ne.s32.totalorder %s4006_s0, %s2394_s20  ;;  %p2398_p9 = scmp.lt.u32.totalorder %s2394_s20, %s4006_s0 }
  0x19   :  { %p2400_p10 = pnand %p2398_p9, %p2395_p8 }
  0x1b   :  { %2403 = shalt.err (!%p2400_p10)
}
  0x1c   :  { %s2461_s26 = smov [#allocation6]   ;;  %s2462_s5 = smov [#allocation9]  }
  0x1d   :  { %29 = dma.hbm_to_smem %s4006_s0, 16, %s2461_s26, [#allocation8]  }
  0x1e   :  { %s40_s24 = sshll.u32 %s2462_s5, 4  ;;  %s2463_s29 = smov [#allocation12]   ;;  %s41_s24 = int_to_ptr.vmem [resolvable:$true] %s40_s24 }
  0x1f   :  { %s63_s30 = sshll.u32 %s2463_s29, 4  ;;  %s2404_s14 = scalar_lea.hbm %s4010_s4, 48  ;;  %s2563_s30 = int_to_ptr.vmem [resolvable:$true] %s63_s30 }
  0x20   :  { %p2405_p11 = scmp.ne.s32.totalorder %s4010_s4, %s2404_s14  ;;  %p2408_p12 = scmp.lt.u32.totalorder %s2404_s14, %s4010_s4 }
  0x22   :  { %p2410_p13 = pnand %p2408_p12, %p2405_p11 }
  0x24   :  { %2413 = shalt.err (!%p2410_p13)
}
  0x25   :  { %s2414_s0 = scalar_lea.vmem %s41_s24, 48  ;;  %s2418_s19 = scalar_lea.vmem %s41_s24, 64 }
  0x26   :  { %p2415_p0 = scmp.ne.s32.totalorder %s41_s24, %s2414_s0  ;;  %p2419_p1 = scmp.lt.s32.totalorder %s41_s24, %s41_s24 }
  0x27   :  { %p2420_p2 = scmp.lt.s32.totalorder %s2418_s19, %s2414_s0 }
  0x29   :  { %p2421_p3 = por %p2420_p2, %p2419_p1 }
  0x2b   :  { %p2422_p4 = pnand %p2421_p3, %p2415_p0 }
  0x2d   :  { %2425 = shalt.err (!%p2422_p4)
}
  0x2e   :  { %43 = dma.hbm_to_vmem [thread:$0]  %s4010_s4, 48, %s41_s24, [#allocation7]  }
  0x2f   :  { %s2426_s25 = scalar_lea.hbm %s4013_s7, 6144 }
  0x30   :  { %p2427_p5 = scmp.ne.s32.totalorder %s4013_s7, %s2426_s25  ;;  %p2430_p6 = scmp.lt.u32.totalorder %s2426_s25, %s4013_s7 }
  0x32   :  { %p2432_p7 = pnand %p2430_p6, %p2427_p5 }
  0x34   :  { %2435 = shalt.err (!%p2432_p7)
}
  0x35   :  { %s2436_s29 = scalar_lea.vmem %s2563_s30, 6144  ;;  %p2441_p9 = scmp.lt.s32.totalorder %s2563_s30, %s2563_s30 }
  0x36   :  { %p2437_p8 = scmp.ne.s32.totalorder %s2563_s30, %s2436_s29  ;;  %p2442_p10 = scmp.lt.s32.totalorder %s2436_s29, %s2436_s29 }
  0x38   :  { %p2443_p11 = por %p2442_p10, %p2441_p9 }
  0x3a   :  { %p2444_p12 = pnand %p2443_p11, %p2437_p8 }
  0x3c   :  { %2447 = shalt.err (!%p2444_p12)
}
  0x3d   :  { %s2464_s4 = smov 384   ;;  %s2465_s24 = smov 24  }
  0x3e   :  { %69 = dma.hbm_to_vmem [thread:$0]  %s4013_s7, 6144, %s2563_s30, [#allocation11], %s2464_s4, %s2464_s4, %s2465_s24  }
  0x3f   :  { %2448 = dma.done.wait [#allocation8], 16  }
  0x40   :  { %2449 = vsyncadd [#allocation8], 4294967280 }
  0x41   :  { %2450 = dma.done.wait [#allocation7], 48  }
  0x42   :  { %2451 = vsyncadd [#allocation7], 4294967248 }
  0x43   :  { %2452 = dma.done.wait [#allocation11], 30720  }
  0x44   :  { %2453 = vsyncadd [#allocation11], 4294936576 }
  0x45   :  { %90 = sfence }
  0x46   :  { %s91_s14 = sld [smem:[#allocation6]] }
  0x4c   :  { %p92_p13 = scmp.gt.s32.totalorder %s91_s14, 0  ;;  %p1661_p0 = scmp.lt.s32.totalorder %s91_s14, 49 }
  0x4e   :  { %s4609_s14 = smov (!%p92_p13, %s91_s14), 0 }
  0x4f   :  { %s4611_s14 = smov (!%p1661_p0, %s4609_s14), 49 }
  0x50   :  { %s96_s17 = scalar_lea.vmem %s4008_s2, %s4611_s14 }
  0x51   :  { %v114_v1 = vld [vmem:[%s96_s17] sm:$0x1] }
  0x52   :  { %115 = vst [vmem:[#allocation2] sm:$0x1] %v114_v1 }
  0x53   :  { %140 = vsyncadd [#allocation4], 16  ;;  %s1666_s7 = sld [smem:[#allocation6 + $0x1]] }
  0x59   :  { %p142_p1 = scmp.gt.s32.totalorder %s1666_s7, 0  ;;  %p1667_p2 = scmp.lt.s32.totalorder %s1666_s7, 49 }
  0x5b   :  { %s4613_s7 = smov (!%p142_p1, %s1666_s7), 0 }
  0x5c   :  { %s4615_s7 = smov (!%p1667_p2, %s4613_s7), 49 }
  0x5d   :  { %s146_s0 = scalar_lea.vmem %s4008_s2, %s4615_s7 }
  0x5e   :  { %v166_v2 = vld [vmem:[%s146_s0] sm:$0x1] }
  0x5f   :  { %167 = vst [vmem:[#allocation2 + $0x1] sm:$0x1] %v166_v2 }
  0x60   :  { %192 = vsyncadd [#allocation4 + $0x1], 16  ;;  %v2600_v3 = vld [vmem:[#allocation10] sm:$0xff]  ;;  %v2602_v4 = vld [vmem:[#allocation10 + $0x8] sm:$0xff]  ;;  %v435_v5 = vlaneseq }
  0x61   :  { %v2604_v6 = vld [vmem:[#allocation10 + $0x10] sm:$0xff]  ;;  %v2606_v7 = vld [vmem:[#allocation10 + $0x18] sm:$0xff]  ;;  %v2608_v8 = vld [vmem:[#allocation10 + $0x20] sm:$0xff] }
  0x62   :  { %4092 = vst [vmem:[#allocation20_spill] sm:$0xff] %v2608_v8  ;;  %v2610_v9 = vld [vmem:[#allocation10 + $0x28] sm:$0xff]  ;;  %v2612_v10 = vld [vmem:[#allocation10 + $0x30] sm:$0xff]  ;;  %v2614_v11 = vld [vmem:[#allocation10 + $0x38] sm:$0xff]  ;;  %v2616_v12 = vshrl.u32 %v435_v5, 7 }
  0x63   :  { %4093 = vst [vmem:[#allocation21_spill] sm:$0xff] %v2610_v9  ;;  %v2618_v13 = vld [vmem:[#allocation10 + $0x40] sm:$0xff]  ;;  %v2620_v14 = vld [vmem:[#allocation10 + $0x48] sm:$0xff]  ;;  %v2622_v15 = vld [vmem:[#allocation10 + $0x50] sm:$0xff] }
  0x64   :  { %4094 = vst [vmem:[#allocation22_spill] sm:$0xff] %v2616_v12  ;;  %4095 = vst [vmem:[#allocation23_spill] sm:$0xff] %v2622_v15  ;;  %v2624_v16 = vld [vmem:[#allocation10 + $0x58] sm:$0xff]  ;;  %v2626_v17 = vld [vmem:[#allocation10 + $0x60] sm:$0xff] }
  0x65   :  { %4096 = vst [vmem:[#allocation24_spill] sm:$0xff] %v2624_v16  ;;  %v2628_v18 = vld [vmem:[#allocation10 + $0x68] sm:$0xff]  ;;  %v2630_v19 = vld [vmem:[#allocation10 + $0x70] sm:$0xff]  ;;  %v2632_v20 = vld [vmem:[#allocation10 + $0x78] sm:$0xff] }
  0x66   :  { %v2634_v21 = vld [vmem:[#allocation10 + $0x80] sm:$0xff]  ;;  %v2636_v22 = vld [vmem:[#allocation10 + $0x88] sm:$0xff]  ;;  %v2638_v23 = vld [vmem:[#allocation10 + $0x90] sm:$0xff] }
  0x67   :  { %4097 = vst [vmem:[#allocation25_spill] sm:$0xff] %v2634_v21  ;;  %4098 = vst [vmem:[#allocation26_spill] sm:$0xff] %v2636_v22  ;;  %v2640_v24 = vld [vmem:[#allocation10 + $0x98] sm:$0xff]  ;;  %v2642_v25 = vld [vmem:[#allocation10 + $0xa0] sm:$0xff] }
  0x68   :  { %v2644_v26 = vld [vmem:[#allocation10 + $0xa8] sm:$0xff]  ;;  %v2646_v27 = vld [vmem:[#allocation10 + $0xb0] sm:$0xff]  ;;  %v2648_v28 = vld [vmem:[#allocation10 + $0xb8] sm:$0xff] }
  0x69   :  { %4099 = vst [vmem:[#allocation27_spill] sm:$0xff] %v2646_v27  ;;  %4100 = vst [vmem:[#allocation28_spill] sm:$0xff] %v2648_v28  ;;  %v2650_v29 = vld [vmem:[#allocation10 + $0xc0] sm:$0xff]  ;;  %v2652_v30 = vld [vmem:[#allocation10 + $0xc8] sm:$0xff] }
  0x6a   :  { %v2654_v31 = vld [vmem:[#allocation10 + $0xd0] sm:$0xff]  ;;  %v2656_v32 = vld [vmem:[#allocation10 + $0xd8] sm:$0xff]  ;;  %v2658_v33 = vld [vmem:[#allocation10 + $0xe0] sm:$0xff] }
  0x6b   :  { %4101 = vst [vmem:[#allocation29_spill] sm:$0xff] %v2658_v33  ;;  %v2660_v34 = vld [vmem:[#allocation10 + $0xe8] sm:$0xff]  ;;  %v2662_v35 = vld [vmem:[#allocation10 + $0xf0] sm:$0xff]  ;;  %v2664_v36 = vld [vmem:[#allocation10 + $0xf8] sm:$0xff] }
  0x6c   :  { %4102 = vst [vmem:[#allocation30_spill] sm:$0xff] %v2660_v34  ;;  %v2666_v37 = vld [vmem:[#allocation10 + $0x100] sm:$0xff]  ;;  %v2668_v38 = vld [vmem:[#allocation10 + $0x108] sm:$0xff]  ;;  %v2670_v39 = vld [vmem:[#allocation10 + $0x110] sm:$0xff] }
  0x6d   :  { %4103 = vst [vmem:[#allocation31_spill] sm:$0xff] %v2670_v39  ;;  %v2672_v40 = vld [vmem:[#allocation10 + $0x118] sm:$0xff]  ;;  %v2674_v41 = vld [vmem:[#allocation10 + $0x120] sm:$0xff]  ;;  %v2676_v42 = vld [vmem:[#allocation10 + $0x128] sm:$0xff] }
  0x6e   :  { %4104 = vst [vmem:[#allocation32_spill] sm:$0xff] %v2672_v40  ;;  %v2678_v43 = vld [vmem:[#allocation10 + $0x130] sm:$0xff]  ;;  %v2680_v44 = vld [vmem:[#allocation10 + $0x138] sm:$0xff]  ;;  %v2682_v45 = vld [vmem:[#allocation10 + $0x140] sm:$0xff] }
  0x6f   :  { %4105 = vst [vmem:[#allocation33_spill] sm:$0xff] %v2682_v45  ;;  %v2684_v46 = vld [vmem:[#allocation10 + $0x148] sm:$0xff]  ;;  %v2686_v47 = vld [vmem:[#allocation10 + $0x150] sm:$0xff]  ;;  %v2688_v48 = vld [vmem:[#allocation10 + $0x158] sm:$0xff] }
  0x70   :  { %4106 = vst [vmem:[#allocation34_spill] sm:$0xff] %v2684_v46  ;;  %v2690_v49 = vld [vmem:[#allocation10 + $0x160] sm:$0xff]  ;;  %v2692_v50 = vld [vmem:[#allocation10 + $0x168] sm:$0xff]  ;;  %v2694_v51 = vld [vmem:[#allocation10 + $0x170] sm:$0xff] }
  0x71   :  { %4107 = vst [vmem:[#allocation35_spill] sm:$0xff] %v2694_v51  ;;  %v2696_v52 = vld [vmem:[#allocation10 + $0x178] sm:$0xff]  ;;  %v2698_v53 = vld [vmem:[#allocation10 + $0x180] sm:$0xff]  ;;  %v2700_v54 = vld [vmem:[#allocation10 + $0x188] sm:$0xff] }
  0x72   :  { %4108 = vst [vmem:[#allocation36_spill] sm:$0xff] %v2696_v52  ;;  %v2702_v55 = vld [vmem:[#allocation10 + $0x190] sm:$0xff]  ;;  %v2704_v56 = vld [vmem:[#allocation10 + $0x198] sm:$0xff]  ;;  %v2706_v57 = vld [vmem:[#allocation10 + $0x1a0] sm:$0xff] }
  0x73   :  { %4109 = vst [vmem:[#allocation37_spill] sm:$0xff] %v2706_v57  ;;  %v2708_v58 = vld [vmem:[#allocation10 + $0x1a8] sm:$0xff]  ;;  %v2710_v59 = vld [vmem:[#allocation10 + $0x1b0] sm:$0xff]  ;;  %v2712_v60 = vld [vmem:[#allocation10 + $0x1b8] sm:$0xff] }
  0x74   :  { %4110 = vst [vmem:[#allocation38_spill] sm:$0xff] %v2708_v58  ;;  %v2714_v61 = vld [vmem:[#allocation10 + $0x1c0] sm:$0xff]  ;;  %v2716_v62 = vld [vmem:[#allocation10 + $0x1c8] sm:$0xff]  ;;  %v2718_v63 = vld [vmem:[#allocation10 + $0x1d0] sm:$0xff] }
  0x75   :  { %4111 = vst [vmem:[#allocation39_spill] sm:$0xff] %v2718_v63  ;;  %v2720_v0 = vld [vmem:[#allocation10 + $0x1d8] sm:$0xff]  ;;  %v2722_v1 = vld [vmem:[#allocation10 + $0x1e0] sm:$0xff]  ;;  %v2724_v2 = vld [vmem:[#allocation10 + $0x1e8] sm:$0xff] }
  0x76   :  { %4112 = vst [vmem:[#allocation40_spill] sm:$0xff] %v2720_v0  ;;  %v2726_v5 = vld [vmem:[#allocation10 + $0x1f0] sm:$0xff]  ;;  %v2728_v12 = vld [vmem:[#allocation10 + $0x1f8] sm:$0xff]  ;;  %v2730_v57 = vld [vmem:[#allocation10 + $0x200] sm:$0xff] }
  0x77   :  { %4113 = vst [vmem:[#allocation41_spill] sm:$0xff] %v2730_v57  ;;  %v2732_v58 = vld [vmem:[#allocation10 + $0x208] sm:$0xff]  ;;  %v2734_v51 = vld [vmem:[#allocation10 + $0x210] sm:$0xff]  ;;  %v2736_v45 = vld [vmem:[#allocation10 + $0x218] sm:$0xff] }
  0x78   :  { %4114 = vst [vmem:[#allocation42_spill] sm:$0xff] %v2732_v58  ;;  %v2738_v52 = vld [vmem:[#allocation10 + $0x220] sm:$0xff]  ;;  %v2740_v63 = vld [vmem:[#allocation10 + $0x228] sm:$0xff]  ;;  %v2742_v0 = vld [vmem:[#allocation10 + $0x230] sm:$0xff] }
  0x79   :  { %4115 = vst [vmem:[#allocation43_spill] sm:$0xff] %v2742_v0  ;;  %v2744_v46 = vld [vmem:[#allocation10 + $0x238] sm:$0xff]  ;;  %v2746_v39 = vld [vmem:[#allocation10 + $0x240] sm:$0xff]  ;;  %v2748_v33 = vld [vmem:[#allocation10 + $0x248] sm:$0xff] }
  0x7a   :  { %4116 = vst [vmem:[#allocation44_spill] sm:$0xff] %v2744_v46  ;;  %4117 = vst [vmem:[#allocation45_spill] sm:$0xff] %v2746_v39  ;;  %v2750_v40 = vld [vmem:[#allocation10 + $0x250] sm:$0xff]  ;;  %v2752_v57 = vld [vmem:[#allocation10 + $0x258] sm:$0xff] }
  0x7b   :  { %4118 = vst [vmem:[#allocation46_spill] sm:$0xff] %v2750_v40  ;;  %v2754_v58 = vld [vmem:[#allocation10 + $0x260] sm:$0xff]  ;;  %v2756_v34 = vld [vmem:[#allocation10 + $0x268] sm:$0xff]  ;;  %v2758_v27 = vld [vmem:[#allocation10 + $0x270] sm:$0xff] }
  0x7c   :  { %4119 = vst [vmem:[#allocation47_spill] sm:$0xff] %v2754_v58  ;;  %4120 = vst [vmem:[#allocation48_spill] sm:$0xff] %v2756_v34  ;;  %v2760_v21 = vld [vmem:[#allocation10 + $0x278] sm:$0xff]  ;;  %v2762_v28 = vld [vmem:[#allocation10 + $0x280] sm:$0xff] }
  0x7d   :  { %4121 = vst [vmem:[#allocation49_spill] sm:$0xff] %v2758_v27  ;;  %4122 = vst [vmem:[#allocation50_spill] sm:$0xff] %v2762_v28  ;;  %v2764_v0 = vld [vmem:[#allocation10 + $0x288] sm:$0xff]  ;;  %v2766_v46 = vld [vmem:[#allocation10 + $0x290] sm:$0xff] }
  0x7e   :  { %4123 = vst [vmem:[#allocation51_spill] sm:$0xff] %v2766_v46  ;;  %v2768_v22 = vld [vmem:[#allocation10 + $0x298] sm:$0xff]  ;;  %v2770_v15 = vld [vmem:[#allocation10 + $0x2a0] sm:$0xff]  ;;  %v2772_v8 = vld [vmem:[#allocation10 + $0x2a8] sm:$0xff] }
  0x7f   :  { %4124 = vst [vmem:[#allocation52_spill] sm:$0xff] %v2768_v22  ;;  %4125 = vst [vmem:[#allocation53_spill] sm:$0xff] %v2770_v15  ;;  %v2774_v16 = vld [vmem:[#allocation10 + $0x2b0] sm:$0xff]  ;;  %v2776_v58 = vld [vmem:[#allocation10 + $0x2b8] sm:$0xff] }
  0x80   :  { %4126 = vst [vmem:[#allocation54_spill] sm:$0xff] %v2772_v8  ;;  %4127 = vst [vmem:[#allocation55_spill] sm:$0xff] %v2774_v16  ;;  %v2778_v34 = vld [vmem:[#allocation10 + $0x2c0] sm:$0xff]  ;;  %v2780_v9 = vld [vmem:[#allocation10 + $0x2c8] sm:$0xff] }
  0x81   :  { %4128 = vst [vmem:[#allocation56_spill] sm:$0xff] %v2776_v58  ;;  %4129 = vst [vmem:[#allocation57_spill] sm:$0xff] %v2778_v34  ;;  %v2782_v40 = vld [vmem:[#allocation10 + $0x2d0] sm:$0xff]  ;;  %v2784_v28 = vld [vmem:[#allocation10 + $0x2d8] sm:$0xff] }
  0x82   :  { %4130 = vst [vmem:[#allocation58_spill] sm:$0xff] %v2780_v9  ;;  %4131 = vst [vmem:[#allocation59_spill] sm:$0xff] %v2782_v40  ;;  %v2786_v27 = vld [vmem:[#allocation10 + $0x2e0] sm:$0xff]  ;;  %v2788_v46 = vld [vmem:[#allocation10 + $0x2e8] sm:$0xff] }
  0x83   :  { %4132 = vst [vmem:[#allocation60_spill] sm:$0xff] %v2784_v28  ;;  %4133 = vst [vmem:[#allocation61_spill] sm:$0xff] %v2786_v27  ;;  %v2790_v22 = vld [vmem:[#allocation10 + $0x2f0] sm:$0xff]  ;;  %v2792_v15 = vld [vmem:[#allocation10 + $0x2f8] sm:$0xff] }
  0x84   :  { %4134 = vst [vmem:[#allocation62_spill] sm:$0xff] %v2788_v46  ;;  %4135 = vst [vmem:[#allocation63_spill] sm:$0xff] %v2790_v22  ;;  %v2794_v8 = vld [vmem:[#allocation10 + $0x300] sm:$0xff]  ;;  %v2796_v16 = vld [vmem:[#allocation10 + $0x308] sm:$0xff] }
  0x85   :  { %4136 = vst [vmem:[#allocation64_spill] sm:$0xff] %v2792_v15  ;;  %4137 = vst [vmem:[#allocation65_spill] sm:$0xff] %v2794_v8  ;;  %v2798_v58 = vld [vmem:[#allocation10 + $0x310] sm:$0xff]  ;;  %v2800_v34 = vld [vmem:[#allocation10 + $0x318] sm:$0xff] }
  0x86   :  { %4138 = vst [vmem:[#allocation66_spill] sm:$0xff] %v2796_v16  ;;  %4139 = vst [vmem:[#allocation67_spill] sm:$0xff] %v2798_v58  ;;  %v2802_v9 = vld [vmem:[#allocation10 + $0x320] sm:$0xff]  ;;  %v2804_v40 = vld [vmem:[#allocation10 + $0x328] sm:$0xff] }
  0x87   :  { %4140 = vst [vmem:[#allocation68_spill] sm:$0xff] %v2800_v34  ;;  %4141 = vst [vmem:[#allocation69_spill] sm:$0xff] %v2802_v9  ;;  %v2806_v28 = vld [vmem:[#allocation10 + $0x330] sm:$0xff]  ;;  %v2808_v27 = vld [vmem:[#allocation10 + $0x338] sm:$0xff] }
  0x88   :  { %4142 = vst [vmem:[#allocation70_spill] sm:$0xff] %v2804_v40  ;;  %4143 = vst [vmem:[#allocation71_spill] sm:$0xff] %v2806_v28  ;;  %v2810_v46 = vld [vmem:[#allocation10 + $0x340] sm:$0xff]  ;;  %v2812_v22 = vld [vmem:[#allocation10 + $0x348] sm:$0xff] }
  0x89   :  { %4144 = vst [vmem:[#allocation72_spill] sm:$0xff] %v2808_v27  ;;  %4145 = vst [vmem:[#allocation73_spill] sm:$0xff] %v2810_v46  ;;  %v2814_v15 = vld [vmem:[#allocation10 + $0x350] sm:$0xff]  ;;  %v2816_v8 = vld [vmem:[#allocation10 + $0x358] sm:$0xff] }
  0x8a   :  { %4146 = vst [vmem:[#allocation74_spill] sm:$0xff] %v2812_v22  ;;  %4147 = vst [vmem:[#allocation75_spill] sm:$0xff] %v2814_v15  ;;  %v2818_v16 = vld [vmem:[#allocation10 + $0x360] sm:$0xff]  ;;  %v2820_v58 = vld [vmem:[#allocation10 + $0x368] sm:$0xff] }
  0x8b   :  { %4148 = vst [vmem:[#allocation76_spill] sm:$0xff] %v2816_v8  ;;  %4149 = vst [vmem:[#allocation77_spill] sm:$0xff] %v2818_v16  ;;  %v2822_v34 = vld [vmem:[#allocation10 + $0x370] sm:$0xff]  ;;  %v2824_v9 = vld [vmem:[#allocation10 + $0x378] sm:$0xff] }
  0x8c   :  { %4150 = vst [vmem:[#allocation78_spill] sm:$0xff] %v2820_v58  ;;  %4151 = vst [vmem:[#allocation79_spill] sm:$0xff] %v2822_v34  ;;  %v2826_v40 = vld [vmem:[#allocation10 + $0x380] sm:$0xff]  ;;  %v2828_v28 = vld [vmem:[#allocation10 + $0x388] sm:$0xff] }
  0x8d   :  { %4152 = vst [vmem:[#allocation80_spill] sm:$0xff] %v2824_v9  ;;  %4153 = vst [vmem:[#allocation81_spill] sm:$0xff] %v2826_v40  ;;  %v2830_v27 = vld [vmem:[#allocation10 + $0x390] sm:$0xff]  ;;  %v2832_v46 = vld [vmem:[#allocation10 + $0x398] sm:$0xff] }
  0x8e   :  { %4154 = vst [vmem:[#allocation82_spill] sm:$0xff] %v2828_v28  ;;  %4155 = vst [vmem:[#allocation83_spill] sm:$0xff] %v2830_v27  ;;  %v2834_v22 = vld [vmem:[#allocation10 + $0x3a0] sm:$0xff]  ;;  %v2836_v15 = vld [vmem:[#allocation10 + $0x3a8] sm:$0xff] }
  0x8f   :  { %4156 = vst [vmem:[#allocation84_spill] sm:$0xff] %v2832_v46  ;;  %4157 = vst [vmem:[#allocation85_spill] sm:$0xff] %v2834_v22  ;;  %v2838_v8 = vld [vmem:[#allocation10 + $0x3b0] sm:$0xff]  ;;  %v2840_v16 = vld [vmem:[#allocation10 + $0x3b8] sm:$0xff] }
  0x90   :  { %4158 = vst [vmem:[#allocation86_spill] sm:$0xff] %v2836_v15  ;;  %4159 = vst [vmem:[#allocation87_spill] sm:$0xff] %v2838_v8  ;;  %v2842_v58 = vld [vmem:[#allocation10 + $0x3c0] sm:$0xff]  ;;  %v2844_v34 = vld [vmem:[#allocation10 + $0x3c8] sm:$0xff] }
  0x91   :  { %4160 = vst [vmem:[#allocation88_spill] sm:$0xff] %v2840_v16  ;;  %4161 = vst [vmem:[#allocation89_spill] sm:$0xff] %v2842_v58  ;;  %v2846_v9 = vld [vmem:[#allocation10 + $0x3d0] sm:$0xff]  ;;  %v2848_v40 = vld [vmem:[#allocation10 + $0x3d8] sm:$0xff] }
  0x92   :  { %4162 = vst [vmem:[#allocation90_spill] sm:$0xff] %v2844_v34  ;;  %4163 = vst [vmem:[#allocation91_spill] sm:$0xff] %v2846_v9  ;;  %v2850_v28 = vld [vmem:[#allocation10 + $0x3e0] sm:$0xff]  ;;  %v2852_v27 = vld [vmem:[#allocation10 + $0x3e8] sm:$0xff] }
  0x93   :  { %4164 = vst [vmem:[#allocation92_spill] sm:$0xff] %v2848_v40  ;;  %4165 = vst [vmem:[#allocation93_spill] sm:$0xff] %v2850_v28  ;;  %v2854_v46 = vld [vmem:[#allocation10 + $0x3f0] sm:$0xff]  ;;  %v2856_v22 = vld [vmem:[#allocation10 + $0x3f8] sm:$0xff] }
  0x94   :  { %4166 = vst [vmem:[#allocation94_spill] sm:$0xff] %v2852_v27  ;;  %4167 = vst [vmem:[#allocation95_spill] sm:$0xff] %v2854_v46  ;;  %v2858_v15 = vld [vmem:[#allocation10 + $0x400] sm:$0xff]  ;;  %v2860_v8 = vld [vmem:[#allocation10 + $0x408] sm:$0xff] }
  0x95   :  { %4168 = vst [vmem:[#allocation96_spill] sm:$0xff] %v2856_v22  ;;  %4169 = vst [vmem:[#allocation97_spill] sm:$0xff] %v2858_v15  ;;  %v2862_v16 = vld [vmem:[#allocation10 + $0x410] sm:$0xff]  ;;  %v2864_v58 = vld [vmem:[#allocation10 + $0x418] sm:$0xff] }
  0x96   :  { %4170 = vst [vmem:[#allocation98_spill] sm:$0xff] %v2860_v8  ;;  %4171 = vst [vmem:[#allocation99_spill] sm:$0xff] %v2862_v16  ;;  %v2866_v34 = vld [vmem:[#allocation10 + $0x420] sm:$0xff]  ;;  %v2868_v9 = vld [vmem:[#allocation10 + $0x428] sm:$0xff] }
  0x97   :  { %4172 = vst [vmem:[#allocation100_spill] sm:$0xff] %v2864_v58  ;;  %4173 = vst [vmem:[#allocation101_spill] sm:$0xff] %v2866_v34  ;;  %v2870_v40 = vld [vmem:[#allocation10 + $0x430] sm:$0xff]  ;;  %v2872_v28 = vld [vmem:[#allocation10 + $0x438] sm:$0xff] }
  0x98   :  { %4174 = vst [vmem:[#allocation102_spill] sm:$0xff] %v2868_v9  ;;  %4175 = vst [vmem:[#allocation103_spill] sm:$0xff] %v2870_v40  ;;  %v2874_v27 = vld [vmem:[#allocation10 + $0x440] sm:$0xff]  ;;  %v2876_v46 = vld [vmem:[#allocation10 + $0x448] sm:$0xff] }
  0x99   :  { %4176 = vst [vmem:[#allocation104_spill] sm:$0xff] %v2872_v28  ;;  %4177 = vst [vmem:[#allocation105_spill] sm:$0xff] %v2874_v27  ;;  %v2878_v22 = vld [vmem:[#allocation10 + $0x450] sm:$0xff]  ;;  %v2880_v15 = vld [vmem:[#allocation10 + $0x458] sm:$0xff] }
  0x9a   :  { %4178 = vst [vmem:[#allocation106_spill] sm:$0xff] %v2876_v46  ;;  %4179 = vst [vmem:[#allocation107_spill] sm:$0xff] %v2878_v22  ;;  %v2882_v8 = vld [vmem:[#allocation10 + $0x460] sm:$0xff]  ;;  %v2884_v16 = vld [vmem:[#allocation10 + $0x468] sm:$0xff] }
  0x9b   :  { %4180 = vst [vmem:[#allocation108_spill] sm:$0xff] %v2880_v15  ;;  %4181 = vst [vmem:[#allocation109_spill] sm:$0xff] %v2882_v8  ;;  %v2886_v58 = vld [vmem:[#allocation10 + $0x470] sm:$0xff]  ;;  %v2888_v34 = vld [vmem:[#allocation10 + $0x478] sm:$0xff] }
  0x9c   :  { %4182 = vst [vmem:[#allocation110_spill] sm:$0xff] %v2884_v16  ;;  %4183 = vst [vmem:[#allocation111_spill] sm:$0xff] %v2886_v58  ;;  %v2890_v9 = vld [vmem:[#allocation10 + $0x480] sm:$0xff]  ;;  %v2892_v40 = vld [vmem:[#allocation10 + $0x488] sm:$0xff] }
  0x9d   :  { %4184 = vst [vmem:[#allocation112_spill] sm:$0xff] %v2888_v34  ;;  %4185 = vst [vmem:[#allocation113_spill] sm:$0xff] %v2890_v9  ;;  %v2894_v28 = vld [vmem:[#allocation10 + $0x490] sm:$0xff]  ;;  %v2896_v27 = vld [vmem:[#allocation10 + $0x498] sm:$0xff] }
  0x9e   :  { %4186 = vst [vmem:[#allocation114_spill] sm:$0xff] %v2892_v40  ;;  %4187 = vst [vmem:[#allocation115_spill] sm:$0xff] %v2894_v28  ;;  %v2898_v46 = vld [vmem:[#allocation10 + $0x4a0] sm:$0xff]  ;;  %v2900_v22 = vld [vmem:[#allocation10 + $0x4a8] sm:$0xff] }
  0x9f   :  { %4188 = vst [vmem:[#allocation116_spill] sm:$0xff] %v2896_v27  ;;  %4189 = vst [vmem:[#allocation117_spill] sm:$0xff] %v2898_v46  ;;  %v2902_v15 = vld [vmem:[#allocation10 + $0x4b0] sm:$0xff]  ;;  %v2904_v8 = vld [vmem:[#allocation10 + $0x4b8] sm:$0xff] }
  0xa0   :  { %4190 = vst [vmem:[#allocation118_spill] sm:$0xff] %v2900_v22  ;;  %4191 = vst [vmem:[#allocation119_spill] sm:$0xff] %v2902_v15  ;;  %v2906_v16 = vld [vmem:[#allocation10 + $0x4c0] sm:$0xff]  ;;  %v2908_v58 = vld [vmem:[#allocation10 + $0x4c8] sm:$0xff] }
  0xa1   :  { %4192 = vst [vmem:[#allocation120_spill] sm:$0xff] %v2904_v8  ;;  %4193 = vst [vmem:[#allocation121_spill] sm:$0xff] %v2906_v16  ;;  %v2910_v34 = vld [vmem:[#allocation10 + $0x4d0] sm:$0xff]  ;;  %v2912_v9 = vld [vmem:[#allocation10 + $0x4d8] sm:$0xff] }
  0xa2   :  { %4194 = vst [vmem:[#allocation122_spill] sm:$0xff] %v2908_v58  ;;  %4195 = vst [vmem:[#allocation123_spill] sm:$0xff] %v2910_v34  ;;  %v2914_v40 = vld [vmem:[#allocation10 + $0x4e0] sm:$0xff]  ;;  %v2916_v28 = vld [vmem:[#allocation10 + $0x4e8] sm:$0xff] }
  0xa3   :  { %4196 = vst [vmem:[#allocation124_spill] sm:$0xff] %v2912_v9  ;;  %4197 = vst [vmem:[#allocation125_spill] sm:$0xff] %v2914_v40  ;;  %v2918_v27 = vld [vmem:[#allocation10 + $0x4f0] sm:$0xff]  ;;  %v2920_v46 = vld [vmem:[#allocation10 + $0x4f8] sm:$0xff] }
  0xa4   :  { %4198 = vst [vmem:[#allocation126_spill] sm:$0xff] %v2916_v28  ;;  %4199 = vst [vmem:[#allocation127_spill] sm:$0xff] %v2918_v27  ;;  %v2922_v22 = vld [vmem:[#allocation10 + $0x500] sm:$0xff]  ;;  %v2924_v15 = vld [vmem:[#allocation10 + $0x508] sm:$0xff] }
  0xa5   :  { %4200 = vst [vmem:[#allocation128_spill] sm:$0xff] %v2920_v46  ;;  %4201 = vst [vmem:[#allocation129_spill] sm:$0xff] %v2922_v22  ;;  %v2926_v8 = vld [vmem:[#allocation10 + $0x510] sm:$0xff]  ;;  %v2928_v16 = vld [vmem:[#allocation10 + $0x518] sm:$0xff] }
  0xa6   :  { %4202 = vst [vmem:[#allocation130_spill] sm:$0xff] %v2924_v15  ;;  %4203 = vst [vmem:[#allocation131_spill] sm:$0xff] %v2926_v8  ;;  %v2930_v58 = vld [vmem:[#allocation10 + $0x520] sm:$0xff]  ;;  %v2932_v34 = vld [vmem:[#allocation10 + $0x528] sm:$0xff] }
  0xa7   :  { %4204 = vst [vmem:[#allocation132_spill] sm:$0xff] %v2928_v16  ;;  %4205 = vst [vmem:[#allocation133_spill] sm:$0xff] %v2930_v58  ;;  %v2934_v9 = vld [vmem:[#allocation10 + $0x530] sm:$0xff]  ;;  %v2936_v40 = vld [vmem:[#allocation10 + $0x538] sm:$0xff] }
  0xa8   :  { %4206 = vst [vmem:[#allocation134_spill] sm:$0xff] %v2932_v34  ;;  %4207 = vst [vmem:[#allocation135_spill] sm:$0xff] %v2934_v9  ;;  %v2938_v28 = vld [vmem:[#allocation10 + $0x540] sm:$0xff]  ;;  %v2940_v27 = vld [vmem:[#allocation10 + $0x548] sm:$0xff] }
  0xa9   :  { %4208 = vst [vmem:[#allocation136_spill] sm:$0xff] %v2936_v40  ;;  %4209 = vst [vmem:[#allocation137_spill] sm:$0xff] %v2938_v28  ;;  %v2942_v46 = vld [vmem:[#allocation10 + $0x550] sm:$0xff]  ;;  %v2944_v22 = vld [vmem:[#allocation10 + $0x558] sm:$0xff] }
  0xaa   :  { %4210 = vst [vmem:[#allocation138_spill] sm:$0xff] %v2940_v27  ;;  %4211 = vst [vmem:[#allocation139_spill] sm:$0xff] %v2942_v46  ;;  %v2946_v15 = vld [vmem:[#allocation10 + $0x560] sm:$0xff]  ;;  %v2948_v8 = vld [vmem:[#allocation10 + $0x568] sm:$0xff] }
  0xab   :  { %4212 = vst [vmem:[#allocation140_spill] sm:$0xff] %v2944_v22  ;;  %4213 = vst [vmem:[#allocation141_spill] sm:$0xff] %v2946_v15  ;;  %v2950_v16 = vld [vmem:[#allocation10 + $0x570] sm:$0xff]  ;;  %v2952_v58 = vld [vmem:[#allocation10 + $0x578] sm:$0xff] }
  0xac   :  { %4214 = vst [vmem:[#allocation142_spill] sm:$0xff] %v2948_v8  ;;  %4215 = vst [vmem:[#allocation143_spill] sm:$0xff] %v2950_v16  ;;  %v2954_v34 = vld [vmem:[#allocation10 + $0x580] sm:$0xff]  ;;  %v2956_v9 = vld [vmem:[#allocation10 + $0x588] sm:$0xff] }
  0xad   :  { %4216 = vst [vmem:[#allocation144_spill] sm:$0xff] %v2952_v58  ;;  %4217 = vst [vmem:[#allocation145_spill] sm:$0xff] %v2954_v34  ;;  %v2958_v40 = vld [vmem:[#allocation10 + $0x590] sm:$0xff]  ;;  %v2960_v28 = vld [vmem:[#allocation10 + $0x598] sm:$0xff] }
  0xae   :  { %4218 = vst [vmem:[#allocation146_spill] sm:$0xff] %v2956_v9  ;;  %4219 = vst [vmem:[#allocation147_spill] sm:$0xff] %v2958_v40  ;;  %v2962_v27 = vld [vmem:[#allocation10 + $0x5a0] sm:$0xff]  ;;  %v2964_v46 = vld [vmem:[#allocation10 + $0x5a8] sm:$0xff] }
  0xaf   :  { %4220 = vst [vmem:[#allocation148_spill] sm:$0xff] %v2960_v28  ;;  %4221 = vst [vmem:[#allocation149_spill] sm:$0xff] %v2962_v27  ;;  %v2966_v22 = vld [vmem:[#allocation10 + $0x5b0] sm:$0xff]  ;;  %v2968_v15 = vld [vmem:[#allocation10 + $0x5b8] sm:$0xff] }
  0xb0   :  { %4222 = vst [vmem:[#allocation150_spill] sm:$0xff] %v2964_v46  ;;  %4223 = vst [vmem:[#allocation151_spill] sm:$0xff] %v2966_v22  ;;  %v2970_v8 = vld [vmem:[#allocation10 + $0x5c0] sm:$0xff]  ;;  %v2972_v16 = vld [vmem:[#allocation10 + $0x5c8] sm:$0xff] }
  0xb1   :  { %4224 = vst [vmem:[#allocation152_spill] sm:$0xff] %v2968_v15  ;;  %4225 = vst [vmem:[#allocation153_spill] sm:$0xff] %v2970_v8  ;;  %v2974_v58 = vld [vmem:[#allocation10 + $0x5d0] sm:$0xff]  ;;  %v2976_v34 = vld [vmem:[#allocation10 + $0x5d8] sm:$0xff] }
  0xb2   :  { %4226 = vst [vmem:[#allocation154_spill] sm:$0xff] %v2972_v16  ;;  %4227 = vst [vmem:[#allocation155_spill] sm:$0xff] %v2974_v58  ;;  %v2978_v9 = vld [vmem:[#allocation10 + $0x5e0] sm:$0xff]  ;;  %v2980_v40 = vld [vmem:[#allocation10 + $0x5e8] sm:$0xff] }
  0xb3   :  { %4228 = vst [vmem:[#allocation156_spill] sm:$0xff] %v2976_v34  ;;  %4229 = vst [vmem:[#allocation157_spill] sm:$0xff] %v2978_v9  ;;  %v2982_v28 = vld [vmem:[#allocation10 + $0x5f0] sm:$0xff]  ;;  %v2984_v27 = vld [vmem:[#allocation10 + $0x5f8] sm:$0xff] }
  0xb4   :  { %4230 = vst [vmem:[#allocation158_spill] sm:$0xff] %v2980_v40  ;;  %4231 = vst [vmem:[#allocation159_spill] sm:$0xff] %v2982_v28  ;;  %v2989_v22 = vld [vmem:[%s4012_s6] sm:$0x3f]  ;;  %v2991_v8 = vld [vmem:[#allocation12] sm:$0xff] }
  0xb5   :  { %4232 = vst [vmem:[#allocation160_spill] sm:$0xff] %v2984_v27  ;;  %4233 = vst [vmem:[#allocation161_spill] sm:$0xff] %v2989_v22  ;;  %v2993_v16 = vld [vmem:[#allocation12 + $0x8] sm:$0xff]  ;;  %v2995_v58 = vld [vmem:[#allocation12 + $0x10] sm:$0xff] }
  0xb6   :  { %4234 = vst [vmem:[#allocation162_spill] sm:$0xff] %v2991_v8  ;;  %4235 = vst [vmem:[#allocation163_spill] sm:$0xff] %v2993_v16  ;;  %v2997_v15 = vld [vmem:[#allocation12 + $0x18] sm:$0xff]  ;;  %v2999_v9 = vld [vmem:[#allocation12 + $0x20] sm:$0xff] }
  0xb7   :  { %4236 = vst [vmem:[#allocation164_spill] sm:$0xff] %v2995_v58  ;;  %4237 = vst [vmem:[#allocation165_spill] sm:$0xff] %v2997_v15  ;;  %v3001_v40 = vld [vmem:[#allocation12 + $0x28] sm:$0xff]  ;;  %v3003_v28 = vld [vmem:[#allocation12 + $0x30] sm:$0xff] }
  0xb8   :  { %4238 = vst [vmem:[#allocation166_spill] sm:$0xff] %v2999_v9  ;;  %4239 = vst [vmem:[#allocation167_spill] sm:$0xff] %v3001_v40  ;;  %v3005_v27 = vld [vmem:[#allocation12 + $0x38] sm:$0xff]  ;;  %v3007_v34 = vld [vmem:[#allocation12 + $0x40] sm:$0xff] }
  0xb9   :  { %4240 = vst [vmem:[#allocation168_spill] sm:$0xff] %v3003_v28  ;;  %4241 = vst [vmem:[#allocation169_spill] sm:$0xff] %v3005_v27  ;;  %v3009_v46 = vld [vmem:[#allocation12 + $0x48] sm:$0xff]  ;;  %v3011_v22 = vld [vmem:[#allocation12 + $0x50] sm:$0xff] }
  0xba   :  { %4242 = vst [vmem:[#allocation170_spill] sm:$0xff] %v3007_v34  ;;  %4243 = vst [vmem:[#allocation171_spill] sm:$0xff] %v3009_v46  ;;  %v3013_v8 = vld [vmem:[#allocation12 + $0x58] sm:$0xff]  ;;  %v3015_v16 = vld [vmem:[#allocation12 + $0x60] sm:$0xff] }
  0xbb   :  { %4244 = vst [vmem:[#allocation172_spill] sm:$0xff] %v3011_v22  ;;  %4245 = vst [vmem:[#allocation173_spill] sm:$0xff] %v3013_v8  ;;  %v3017_v58 = vld [vmem:[#allocation12 + $0x68] sm:$0xff]  ;;  %v3019_v15 = vld [vmem:[#allocation12 + $0x70] sm:$0xff] }
  0xbc   :  { %4246 = vst [vmem:[#allocation174_spill] sm:$0xff] %v3015_v16  ;;  %4247 = vst [vmem:[#allocation175_spill] sm:$0xff] %v3017_v58  ;;  %v3021_v9 = vld [vmem:[#allocation12 + $0x78] sm:$0xff]  ;;  %v3023_v40 = vld [vmem:[#allocation12 + $0x80] sm:$0xff] }
  0xbd   :  { %4248 = vst [vmem:[#allocation176_spill] sm:$0xff] %v3019_v15  ;;  %4249 = vst [vmem:[#allocation177_spill] sm:$0xff] %v3021_v9  ;;  %v3025_v28 = vld [vmem:[#allocation12 + $0x88] sm:$0xff]  ;;  %v3027_v27 = vld [vmem:[#allocation12 + $0x90] sm:$0xff] }
  0xbe   :  { %4250 = vst [vmem:[#allocation178_spill] sm:$0xff] %v3023_v40  ;;  %4251 = vst [vmem:[#allocation179_spill] sm:$0xff] %v3025_v28  ;;  %v3029_v34 = vld [vmem:[#allocation12 + $0x98] sm:$0xff]  ;;  %v3031_v46 = vld [vmem:[#allocation12 + $0xa0] sm:$0xff] }
  0xbf   :  { %4252 = vst [vmem:[#allocation180_spill] sm:$0xff] %v3027_v27  ;;  %4253 = vst [vmem:[#allocation181_spill] sm:$0xff] %v3029_v34  ;;  %v3033_v22 = vld [vmem:[#allocation12 + $0xa8] sm:$0xff]  ;;  %v3035_v8 = vld [vmem:[#allocation12 + $0xb0] sm:$0xff] }
  0xc0   :  { %4254 = vst [vmem:[#allocation182_spill] sm:$0xff] %v3031_v46  ;;  %4255 = vst [vmem:[#allocation183_spill] sm:$0xff] %v3033_v22  ;;  %v3037_v16 = vld [vmem:[#allocation12 + $0xb8] sm:$0xff]  ;;  %v3039_v58 = vld [vmem:[#allocation12 + $0xc0] sm:$0xff] }
  0xc1   :  { %4256 = vst [vmem:[#allocation184_spill] sm:$0xff] %v3035_v8  ;;  %4257 = vst [vmem:[#allocation185_spill] sm:$0xff] %v3037_v16  ;;  %v3041_v15 = vld [vmem:[#allocation12 + $0xc8] sm:$0xff]  ;;  %v3043_v9 = vld [vmem:[#allocation12 + $0xd0] sm:$0xff] }
  0xc2   :  { %4258 = vst [vmem:[#allocation186_spill] sm:$0xff] %v3039_v58  ;;  %4259 = vst [vmem:[#allocation187_spill] sm:$0xff] %v3041_v15  ;;  %v3045_v40 = vld [vmem:[#allocation12 + $0xd8] sm:$0xff]  ;;  %v3047_v28 = vld [vmem:[#allocation12 + $0xe0] sm:$0xff] }
  0xc3   :  { %4260 = vst [vmem:[#allocation188_spill] sm:$0xff] %v3043_v9  ;;  %4261 = vst [vmem:[#allocation189_spill] sm:$0xff] %v3045_v40  ;;  %v3049_v27 = vld [vmem:[#allocation12 + $0xe8] sm:$0xff]  ;;  %v3051_v34 = vld [vmem:[#allocation12 + $0xf0] sm:$0xff] }
  0xc4   :  { %4262 = vst [vmem:[#allocation190_spill] sm:$0xff] %v3047_v28  ;;  %4263 = vst [vmem:[#allocation191_spill] sm:$0xff] %v3049_v27  ;;  %v3053_v46 = vld [vmem:[#allocation12 + $0xf8] sm:$0xff]  ;;  %v3055_v22 = vld [vmem:[#allocation12 + $0x100] sm:$0xff] }
  0xc5   :  { %4264 = vst [vmem:[#allocation192_spill] sm:$0xff] %v3051_v34  ;;  %4265 = vst [vmem:[#allocation193_spill] sm:$0xff] %v3053_v46  ;;  %v3057_v8 = vld [vmem:[#allocation12 + $0x108] sm:$0xff]  ;;  %v3059_v16 = vld [vmem:[#allocation12 + $0x110] sm:$0xff] }
  0xc6   :  { %4266 = vst [vmem:[#allocation194_spill] sm:$0xff] %v3055_v22  ;;  %4267 = vst [vmem:[#allocation195_spill] sm:$0xff] %v3057_v8  ;;  %v3061_v58 = vld [vmem:[#allocation12 + $0x118] sm:$0xff]  ;;  %v3063_v15 = vld [vmem:[#allocation12 + $0x120] sm:$0xff] }
  0xc7   :  { %4268 = vst [vmem:[#allocation196_spill] sm:$0xff] %v3059_v16  ;;  %4269 = vst [vmem:[#allocation197_spill] sm:$0xff] %v3061_v58  ;;  %v3065_v9 = vld [vmem:[#allocation12 + $0x128] sm:$0xff]  ;;  %v3067_v40 = vld [vmem:[#allocation12 + $0x130] sm:$0xff] }
  0xc8   :  { %4270 = vst [vmem:[#allocation198_spill] sm:$0xff] %v3063_v15  ;;  %4271 = vst [vmem:[#allocation199_spill] sm:$0xff] %v3065_v9  ;;  %v3069_v28 = vld [vmem:[#allocation12 + $0x138] sm:$0xff]  ;;  %v3071_v27 = vld [vmem:[#allocation12 + $0x140] sm:$0xff] }
  0xc9   :  { %4272 = vst [vmem:[#allocation200_spill] sm:$0xff] %v3067_v40  ;;  %4273 = vst [vmem:[#allocation201_spill] sm:$0xff] %v3069_v28  ;;  %v3073_v34 = vld [vmem:[#allocation12 + $0x148] sm:$0xff]  ;;  %v3075_v46 = vld [vmem:[#allocation12 + $0x150] sm:$0xff] }
  0xca   :  { %4274 = vst [vmem:[#allocation202_spill] sm:$0xff] %v3071_v27  ;;  %4275 = vst [vmem:[#allocation203_spill] sm:$0xff] %v3073_v34  ;;  %v3077_v22 = vld [vmem:[#allocation12 + $0x158] sm:$0xff]  ;;  %v3079_v8 = vld [vmem:[#allocation12 + $0x160] sm:$0xff] }
  0xcb   :  { %4276 = vst [vmem:[#allocation204_spill] sm:$0xff] %v3075_v46  ;;  %4277 = vst [vmem:[#allocation205_spill] sm:$0xff] %v3077_v22  ;;  %v3081_v16 = vld [vmem:[#allocation12 + $0x168] sm:$0xff]  ;;  %v3083_v58 = vld [vmem:[#allocation12 + $0x170] sm:$0xff] }
  0xcc   :  { %4278 = vst [vmem:[#allocation206_spill] sm:$0xff] %v3079_v8  ;;  %4279 = vst [vmem:[#allocation207_spill] sm:$0xff] %v3081_v16  ;;  %v3085_v15 = vld [vmem:[#allocation12 + $0x178] sm:$0xff]  ;;  %v3090_v40 = vld [vmem:[%s4014_s8] sm:$0x7] }
  0xcd   :  { %4280 = vst [vmem:[#allocation208_spill] sm:$0xff] %v3083_v58  ;;  %4281 = vst [vmem:[#allocation209_spill] sm:$0xff] %v3085_v15 }
  0xce   :  { %4282 = vst [vmem:[#allocation210_spill] sm:$0xff] %v3090_v40 }
  0xcf   :  { %2454 = dma.done.wait [#allocation4], 16 }
  0xd0   :  { %2455 = vsyncadd [#allocation4], 4294967280 }
  0xd1   :  { %2456 = dma.done.wait [#allocation4 + $0x1], 16 }
  0xd2   :  { %2457 = vsyncadd [#allocation4 + $0x1], 4294967280  ;;  %v4022_v34 = vmov 0.0|0.0   ;;  %v4024_v46 = vmov 0.0   ;;  %vm2468_vm0 = vmmov 0   ;;  %v444_v15 = vld [vmem:[%s4009_s3 + $0x8] sm:$0xff] }
  0xd3   :  { %1817 = vmatprep.subr.bf16.mxu1 %v4022_v34  ;;  %540 = vmatprep.mubr.f32.mxu0 %v4024_v46  ;;  %v447_v40 = vld [vmem:[%s4009_s3 + $0x20] sm:$0xff]  ;;  %v446_v16 = vld [vmem:[%s4009_s3 + $0x18] sm:$0xff]  ;;  %v453_v58 = vld [vmem:[%s4009_s3 + $0x50] sm:$0xff]  ;;  %vm472_vm1 = vcmask 261120   ;;  %vm1581_vm2 = vcmask 1041408   ;;  %vm1585_vm3 = vcmask 353280  }
  0xd4   :  { %1736 = vmatprep.mubr.msk.f32.mxu1 %vm2468_vm0, %v4024_v46  ;;  %v443_v8 = vld [vmem:[%s4009_s3] sm:$0xff]  ;;  %v1809_v34 = vpack.c.bf16 %v447_v40, %v444_v15  ;;  %v450_v46 = vld [vmem:[%s4009_s3 + $0x38] sm:$0xff]  ;;  %v445_v27 = vld [vmem:[%s4009_s3 + $0x10] sm:$0xff]  ;;  %vm1616_vm6 = vcmask 1024  }
  0xd5   :  { %v1811_v22 = vpack.c.bf16 %v446_v16, %v443_v8  ;;  %v1813_v28 = vpack.c.bf16 %v453_v58, %v450_v46  ;;  %v448_v15 = vld [vmem:[%s4009_s3 + $0x28] sm:$0xff]  ;;  %v449_v40 = vld [vmem:[%s4009_s3 + $0x30] sm:$0xff]  ;;  %v451_v8 = vld [vmem:[%s4009_s3 + $0x40] sm:$0xff] }
  0xd6   :  { %1810 = vmatprep.subr.bf16.mxu0 %v1809_v34  ;;  %v1818_v9 = vpack.c.bf16 %v448_v15, %v445_v27  ;;  %v452_v39 = vld [vmem:[%s4009_s3 + $0x48] sm:$0xff]  ;;  %v454_v46 = vld [vmem:[%s4009_s3 + $0x58] sm:$0xff]  ;;  %v3134_v27 = vpack.c.bf16 %v2614_v11, %v2602_v4  ;;  %v4283_v34 = vmov 0.0|0.0   ;;  %v3139_v15 = vpack.c.bf16 %v2620_v14, %v2606_v7 }
  0xd7   :  { %1812 = vmatpush1.bf16.msra.mxu0 %v1811_v22  ;;  %v1815_v16 = vpack.c.bf16 %v452_v39, %v449_v40  ;;  %v1821_v58 = vpack.c.bf16 %v454_v46, %v451_v8  ;;  %v442_v22 = vld [vmem:[#allocation2] sm:$0x3]  ;;  %v3143_v39 = vpack.c.bf16 %v2612_v10, %v2600_v3  ;;  %v3148_v4 = vpack.c.bf16 %v2640_v24, %v2628_v18  ;;  %v4309_v40 = vld [vmem:[#allocation67_spill] sm:$0xff]  ;;  %v4310_v8 = vld [vmem:[#allocation73_spill] sm:$0xff] }
  0xd8   :  { %1814 = vmatprep.subr.bf16.mxu0 %v1813_v28  ;;  %1819 = vmatpush3.bf16.msra.mxu1 %v1818_v9  ;;  %v3152_v9 = vpack.c.bf16 %v2618_v13, %v2604_v6  ;;  %v3157_v7 = vpack.c.bf16 %v2644_v26, %v2632_v20  ;;  %v3162_v3 = vpack.c.bf16 %v2638_v23, %v2626_v17  ;;  %v4284_v13 = vmov 0.0   ;;  %v4312_v46 = vld [vmem:[#allocation80_spill] sm:$0xff] }
  0xd9   :  { %1820 = vmatprep.subr.bf16.mxu1 %v4283_v34  ;;  %v3167_v6 = vpack.c.bf16 %v2664_v36, %v2652_v30  ;;  %v3172_v10 = vpack.c.bf16 %v2642_v25, %v2630_v19  ;;  %v3177_v11 = vpack.c.bf16 %v2668_v38, %v2656_v32  ;;  %v3184_v14 = vpack.c.bf16 %v2662_v35, %v2650_v29  ;;  %v4285_v36 = vld [vmem:[#allocation45_spill] sm:$0xff] }
  0xda   :  { %v3189_v17 = vpack.c.bf16 %v2688_v48, %v2676_v42  ;;  %v3194_v18 = vpack.c.bf16 %v2666_v37, %v2654_v31  ;;  %v3199_v19 = vpack.c.bf16 %v2692_v50, %v2680_v44  ;;  %v3204_v20 = vpack.c.bf16 %v2686_v47, %v2674_v41  ;;  %v4286_v37 = vld [vmem:[#allocation49_spill] sm:$0xff]  ;;  %v4289_v42 = vld [vmem:[#allocation46_spill] sm:$0xff]  ;;  %v4296_v50 = vld [vmem:[#allocation59_spill] sm:$0xff] }
  0xdb   :  { %1816 = vmatpush1.bf16.msra.mxu0 %v1815_v16  ;;  %v3209_v23 = vpack.c.bf16 %v2712_v60, %v2700_v54  ;;  %v3214_v24 = vpack.c.bf16 %v2690_v49, %v2678_v43  ;;  %v3219_v25 = vpack.c.bf16 %v2716_v62, %v2704_v56  ;;  %v3224_v26 = vpack.c.bf16 %v2710_v59, %v2698_v53  ;;  %v4290_v43 = vld [vmem:[#allocation50_spill] sm:$0xff]  ;;  %v4295_v49 = vld [vmem:[#allocation53_spill] sm:$0xff]  ;;  %v4298_v53 = vld [vmem:[#allocation72_spill] sm:$0xff] }
  0xdc   :  { %1822 = vmatpush3.bf16.msra.mxu1 %v1821_v58  ;;  %1824 = vmatprep.subr.bf16.mxu0 %v3134_v27  ;;  %v3229_v28 = vpack.c.bf16 %v2736_v45, %v2724_v2  ;;  %v3234_v29 = vpack.c.bf16 %v2714_v61, %v2702_v55  ;;  %v3239_v30 = vpack.c.bf16 %v2740_v63, %v2728_v12  ;;  %v4292_v45 = vld [vmem:[#allocation56_spill] sm:$0xff]  ;;  %v4293_v47 = vld [vmem:[#allocation62_spill] sm:$0xff]  ;;  %v4299_v55 = vld [vmem:[#allocation55_spill] sm:$0xff] }
  0xdd   :  { %1888 = vmatprep.subr.bf16.mxu1 %v3139_v15  ;;  %v3244_v31 = vpack.c.bf16 %v2734_v51, %v2722_v1  ;;  %v3249_v32 = vpack.c.bf16 %v2760_v21, %v2748_v33  ;;  %v3254_v35 = vpack.c.bf16 %v2738_v52, %v2726_v5  ;;  %v3259_v12 = vpack.c.bf16 %v2764_v0, %v2752_v57  ;;  %v4287_v21 = vld [vmem:[#allocation54_spill] sm:$0xff]  ;;  %v4288_v33 = vld [vmem:[#allocation60_spill] sm:$0xff]  ;;  %v4300_v56 = vld [vmem:[#allocation61_spill] sm:$0xff] }
  0xde   :  { %1672 = vmatmul.mubr.msk.f32.vlgmr.msra.gmra.mrb[0].mxu0 %vm472_vm1, %v442_v22  ;;  %v3264_v38 = vpack.c.bf16 %v4286_v37, %v4285_v36  ;;  %v3269_v41 = vpack.c.bf16 %v4288_v33, %v4287_v21  ;;  %v3274_v44 = vpack.c.bf16 %v4290_v43, %v4289_v42  ;;  %v3279_v48 = vpack.c.bf16 %v4293_v47, %v4292_v45  ;;  %v4297_v52 = vld [vmem:[#allocation66_spill] sm:$0xff]  ;;  %v4302_v59 = vld [vmem:[#allocation68_spill] sm:$0xff]  ;;  %v4305_v62 = vld [vmem:[#allocation65_spill] sm:$0xff] }
  0xdf   :  { %1826 = vmatpush1.bf16.msra.mxu0 %v3143_v39  ;;  %1737 = vmatmul.mubr.msk.f32.vlgmr.msra.gmra.mrb[0].mxu1 %vm472_vm1, %v442_v22  ;;  %v3284_v51 = vpack.c.bf16 %v4296_v50, %v4295_v49  ;;  %v3289_v54 = vpack.c.bf16 %v4298_v53, %v4297_v52  ;;  %v3294_v57 = vpack.c.bf16 %v4300_v56, %v4299_v55  ;;  %v4303_v60 = vld [vmem:[#allocation74_spill] sm:$0xff]  ;;  %v4306_v63 = vld [vmem:[#allocation71_spill] sm:$0xff]  ;;  %v4308_v2 = vld [vmem:[#allocation84_spill] sm:$0xff] }
  0xe0   :  { %1828 = vmatprep.subr.bf16.mxu0 %v3148_v4  ;;  %1890 = vmatpush1.bf16.msra.mxu1 %v3152_v9  ;;  %4291 = vst [vmem:[#allocation45_spill] sm:$0xff] %v3274_v44  ;;  %4294 = vst [vmem:[#allocation49_spill] sm:$0xff] %v3279_v48  ;;  %v3299_v61 = vpack.c.bf16 %v4303_v60, %v4302_v59  ;;  %v3304_v0 = vpack.c.bf16 %v4306_v63, %v4305_v62  ;;  %v4307_v1 = vld [vmem:[#allocation78_spill] sm:$0xff]  ;;  %v4315_v36 = vld [vmem:[#allocation77_spill] sm:$0xff] }
  0xe1   :  { %1892 = vmatprep.subr.bf16.mxu1 %v3157_v7  ;;  %733 = vmatprep.mubr.f32.mxu0 %v4284_v13  ;;  %4301 = vst [vmem:[#allocation54_spill] sm:$0xff] %v3294_v57  ;;  %v3309_v5 = vpack.c.bf16 %v4308_v2, %v4307_v1  ;;  %v3314_v16 = vpack.c.bf16 %v4310_v8, %v4309_v40  ;;  %v4313_v58 = vld [vmem:[#allocation86_spill] sm:$0xff]  ;;  %v4316_v37 = vld [vmem:[#allocation83_spill] sm:$0xff]  ;;  %v4318_v42 = vld [vmem:[#allocation96_spill] sm:$0xff] }
  0xe2   :  { %804 = vmatprep.mubr.f32.mxu1 %v4284_v13  ;;  %4304 = vst [vmem:[#allocation60_spill] sm:$0xff] %v3299_v61  ;;  %v3319_v22 = vpack.c.bf16 %v4313_v58, %v4312_v46  ;;  %v3324_v21 = vpack.c.bf16 %v4316_v37, %v4315_v36  ;;  %v4317_v33 = vld [vmem:[#allocation90_spill] sm:$0xff]  ;;  %v4319_v45 = vld [vmem:[#allocation79_spill] sm:$0xff]  ;;  %v4320_v47 = vld [vmem:[#allocation85_spill] sm:$0xff] }
  0xe3   :  { %1830 = vmatpush1.bf16.msra.mxu0 %v3162_v3  ;;  %4311 = vst [vmem:[#allocation46_spill] sm:$0xff] %v3314_v16  ;;  %v3329_v43 = vpack.c.bf16 %v4318_v42, %v4317_v33  ;;  %v3334_v49 = vpack.c.bf16 %v4320_v47, %v4319_v45  ;;  %v4322_v50 = vld [vmem:[#allocation92_spill] sm:$0xff]  ;;  %v4323_v52 = vld [vmem:[#allocation98_spill] sm:$0xff]  ;;  %v4325_v55 = vld [vmem:[#allocation89_spill] sm:$0xff] }
  0xe4   :  { %1832 = vmatprep.subr.bf16.mxu0 %v3167_v6  ;;  %1894 = vmatpush1.bf16.msra.mxu1 %v3172_v10  ;;  %4314 = vst [vmem:[#allocation50_spill] sm:$0xff] %v3319_v22  ;;  %v3339_v53 = vpack.c.bf16 %v4323_v52, %v4322_v50  ;;  %v4326_v56 = vld [vmem:[#allocation95_spill] sm:$0xff]  ;;  %v4327_v60 = vld [vmem:[#allocation102_spill] sm:$0xff]  ;;  %v4328_v62 = vld [vmem:[#allocation108_spill] sm:$0xff] }
  0xe5   :  { %1896 = vmatprep.subr.bf16.mxu1 %v3177_v11  ;;  %4321 = vst [vmem:[#allocation56_spill] sm:$0xff] %v3334_v49  ;;  %v3344_v59 = vpack.c.bf16 %v4326_v56, %v4325_v55  ;;  %v3349_v63 = vpack.c.bf16 %v4328_v62, %v4327_v60  ;;  %v4329_v1 = vld [vmem:[#allocation91_spill] sm:$0xff]  ;;  %v4330_v2 = vld [vmem:[#allocation97_spill] sm:$0xff]  ;;  %v4332_v8 = vld [vmem:[#allocation104_spill] sm:$0xff] }
  0xe6   :  { %4324 = vst [vmem:[#allocation62_spill] sm:$0xff] %v3339_v53  ;;  %v3354_v40 = vpack.c.bf16 %v4330_v2, %v4329_v1  ;;  %v4333_v46 = vld [vmem:[#allocation110_spill] sm:$0xff]  ;;  %v4335_v36 = vld [vmem:[#allocation101_spill] sm:$0xff]  ;;  %v4336_v37 = vld [vmem:[#allocation107_spill] sm:$0xff] }
  0xe7   :  { %1834 = vmatpush1.bf16.msra.mxu0 %v3184_v14  ;;  %v3359_v58 = vpack.c.bf16 %v4333_v46, %v4332_v8  ;;  %v3364_v33 = vpack.c.bf16 %v4336_v37, %v4335_v36  ;;  %v4337_v42 = vld [vmem:[#allocation114_spill] sm:$0xff]  ;;  %v4338_v45 = vld [vmem:[#allocation120_spill] sm:$0xff]  ;;  %v4339_v50 = vld [vmem:[#allocation103_spill] sm:$0xff] }
  0xe8   :  { %1836 = vmatprep.subr.bf16.mxu0 %v3189_v17  ;;  %1898 = vmatpush1.bf16.msra.mxu1 %v3194_v18  ;;  %4331 = vst [vmem:[#allocation53_spill] sm:$0xff] %v3354_v40  ;;  %v3369_v47 = vpack.c.bf16 %v4338_v45, %v4337_v42  ;;  %v4340_v52 = vld [vmem:[#allocation109_spill] sm:$0xff]  ;;  %v4342_v56 = vld [vmem:[#allocation116_spill] sm:$0xff]  ;;  %v4343_v60 = vld [vmem:[#allocation122_spill] sm:$0xff] }
  0xe9   :  { %1900 = vmatprep.subr.bf16.mxu1 %v3199_v19  ;;  %4334 = vst [vmem:[#allocation59_spill] sm:$0xff] %v3359_v58  ;;  %v3374_v55 = vpack.c.bf16 %v4340_v52, %v4339_v50  ;;  %v3379_v62 = vpack.c.bf16 %v4343_v60, %v4342_v56  ;;  %v4345_v1 = vld [vmem:[#allocation113_spill] sm:$0xff]  ;;  %v4346_v2 = vld [vmem:[#allocation119_spill] sm:$0xff]  ;;  %v4347_v46 = vld [vmem:[#allocation126_spill] sm:$0xff] }
  0xea   :  { %v3384_v8 = vpack.c.bf16 %v4346_v2, %v4345_v1  ;;  %v4348_v36 = vld [vmem:[#allocation132_spill] sm:$0xff]  ;;  %v4349_v42 = vld [vmem:[#allocation115_spill] sm:$0xff]  ;;  %v4350_v45 = vld [vmem:[#allocation121_spill] sm:$0xff] }
  0xeb   :  { %1838 = vmatpush1.bf16.msra.mxu0 %v3204_v20  ;;  %4341 = vst [vmem:[#allocation66_spill] sm:$0xff] %v3374_v55  ;;  %4344 = vst [vmem:[#allocation72_spill] sm:$0xff] %v3379_v62  ;;  %v3389_v37 = vpack.c.bf16 %v4348_v36, %v4347_v46  ;;  %v3394_v50 = vpack.c.bf16 %v4350_v45, %v4349_v42  ;;  %v4352_v52 = vld [vmem:[#allocation128_spill] sm:$0xff]  ;;  %v4353_v56 = vld [vmem:[#allocation134_spill] sm:$0xff] }
  0xec   :  { %1840 = vmatprep.subr.bf16.mxu0 %v3209_v23  ;;  %1902 = vmatpush1.bf16.msra.mxu1 %v3214_v24  ;;  %v3399_v60 = vpack.c.bf16 %v4353_v56, %v4352_v52  ;;  %v4355_v1 = vld [vmem:[#allocation125_spill] sm:$0xff]  ;;  %v4356_v2 = vld [vmem:[#allocation131_spill] sm:$0xff]  ;;  %v4357_v46 = vld [vmem:[#allocation138_spill] sm:$0xff] }
  0xed   :  { %1904 = vmatprep.subr.bf16.mxu1 %v3219_v25  ;;  %4351 = vst [vmem:[#allocation55_spill] sm:$0xff] %v3394_v50  ;;  %v4358_v36 = vld [vmem:[#allocation144_spill] sm:$0xff]  ;;  %v4359_v42 = vld [vmem:[#allocation127_spill] sm:$0xff]  ;;  %v4360_v45 = vld [vmem:[#allocation133_spill] sm:$0xff] }
  0xee   :  { %4354 = vst [vmem:[#allocation61_spill] sm:$0xff] %v3399_v60  ;;  %v4362_v52 = vld [vmem:[#allocation140_spill] sm:$0xff]  ;;  %v4363_v56 = vld [vmem:[#allocation146_spill] sm:$0xff] }
  0xef   :  { %1842 = vmatpush1.bf16.msra.mxu0 %v3224_v26 }
  0xf0   :  { %1844 = vmatprep.subr.bf16.mxu0 %v3229_v28  ;;  %1906 = vmatpush1.bf16.msra.mxu1 %v3234_v29 }
  0xf1   :  { %1908 = vmatprep.subr.bf16.mxu1 %v3239_v30 }
  0xf3   :  { %1846 = vmatpush1.bf16.msra.mxu0 %v3244_v31 }
  0xf4   :  { %1848 = vmatprep.subr.bf16.mxu0 %v3249_v32  ;;  %1910 = vmatpush1.bf16.msra.mxu1 %v3254_v35 }
  0xf5   :  { %1912 = vmatprep.subr.bf16.mxu1 %v3259_v12 }
  0xf7   :  { %1850 = vmatpush1.bf16.msra.mxu0 %v3264_v38 }
  0xf8   :  { %1852 = vmatprep.subr.bf16.mxu0 %v3269_v41  ;;  %1914 = vmatpush1.bf16.msra.mxu1 %v3274_v44  ;;  %v4422_v44 = vld [vmem:[#allocation172_spill] sm:$0xff] }
  0xf9   :  { %1916 = vmatprep.subr.bf16.mxu1 %v3279_v48 }
  0xfb   :  { %1854 = vmatpush1.bf16.msra.mxu0 %v3284_v51 }
  0xfc   :  { %1856 = vmatprep.subr.bf16.mxu0 %v3289_v54  ;;  %1918 = vmatpush1.bf16.msra.mxu1 %v3294_v57  ;;  %v4410_v57 = vld [vmem:[#allocation44_spill] sm:$0xff] }
  0xfd   :  { %1920 = vmatprep.subr.bf16.mxu1 %v3299_v61 }
  0xff   :  { %1858 = vmatpush1.bf16.msra.mxu0 %v3304_v0 }
 0x100   :  { %1860 = vmatprep.subr.bf16.mxu0 %v3309_v5  ;;  %1922 = vmatpush1.bf16.msra.mxu1 %v3314_v16  ;;  %v4395_v16 = vld [vmem:[#allocation31_spill] sm:$0xff] }
 0x101   :  { %1924 = vmatprep.subr.bf16.mxu1 %v3319_v22 }
 0x103   :  { %1862 = vmatpush1.bf16.msra.mxu0 %v3324_v21 }
 0x104   :  { %1864 = vmatprep.subr.bf16.mxu0 %v3329_v43  ;;  %1926 = vmatpush1.bf16.msra.mxu1 %v3334_v49 }
 0x105   :  { %1928 = vmatprep.subr.bf16.mxu1 %v3339_v53 }
 0x107   :  { %1866 = vmatpush1.bf16.msra.mxu0 %v3344_v59 }
 0x108   :  { %1868 = vmatprep.subr.bf16.mxu0 %v3349_v63  ;;  %1930 = vmatpush1.bf16.msra.mxu1 %v3354_v40  ;;  %v3419_v40 = vpack.c.bf16 %v4363_v56, %v4362_v52  ;;  %v4372_v52 = vld [vmem:[#allocation152_spill] sm:$0xff]  ;;  %v4373_v56 = vld [vmem:[#allocation158_spill] sm:$0xff] }
 0x109   :  { %1932 = vmatprep.subr.bf16.mxu1 %v3359_v58  ;;  %v3404_v58 = vpack.c.bf16 %v4356_v2, %v4355_v1  ;;  %v4365_v1 = vld [vmem:[#allocation137_spill] sm:$0xff]  ;;  %v4366_v2 = vld [vmem:[#allocation143_spill] sm:$0xff]  ;;  %v3439_v49 = vpack.c.bf16 %v4373_v56, %v4372_v52  ;;  %v4381_v52 = vld [vmem:[#allocation24_spill] sm:$0xff] }
 0x10a   :  { %4364 = vst [vmem:[#allocation74_spill] sm:$0xff] %v3419_v40  ;;  %v3424_v53 = vpack.c.bf16 %v4366_v2, %v4365_v1  ;;  %v4375_v1 = vld [vmem:[#allocation149_spill] sm:$0xff]  ;;  %v4376_v2 = vld [vmem:[#allocation155_spill] sm:$0xff] }
 0x10b   :  { %1870 = vmatpush1.bf16.msra.mxu0 %v3364_v33  ;;  %4374 = vst [vmem:[#allocation71_spill] sm:$0xff] %v3439_v49  ;;  %v3444_v22 = vpack.c.bf16 %v4376_v2, %v4375_v1  ;;  %v4382_v1 = vld [vmem:[#allocation20_spill] sm:$0xff]  ;;  %v4383_v2 = vld [vmem:[#allocation23_spill] sm:$0xff] }
 0x10c   :  { %1872 = vmatprep.subr.bf16.mxu0 %v3369_v47  ;;  %1934 = vmatpush1.bf16.msra.mxu1 %v3374_v55  ;;  %v3409_v55 = vpack.c.bf16 %v4358_v36, %v4357_v46  ;;  %v4367_v46 = vld [vmem:[#allocation150_spill] sm:$0xff]  ;;  %v4368_v36 = vld [vmem:[#allocation156_spill] sm:$0xff] }
 0x10d   :  { %1936 = vmatprep.subr.bf16.mxu1 %v3379_v62  ;;  %v3414_v62 = vpack.c.bf16 %v4360_v45, %v4359_v42  ;;  %v4369_v42 = vld [vmem:[#allocation139_spill] sm:$0xff]  ;;  %v4370_v45 = vld [vmem:[#allocation145_spill] sm:$0xff] }
 0x10f   :  { %1874 = vmatpush1.bf16.msra.mxu0 %v3384_v8  ;;  %4361 = vst [vmem:[#allocation68_spill] sm:$0xff] %v3414_v62 }
 0x110   :  { %1876 = vmatprep.subr.bf16.mxu0 %v3389_v37  ;;  %1938 = vmatpush1.bf16.msra.mxu1 %v3394_v50  ;;  %v3429_v50 = vpack.c.bf16 %v4368_v36, %v4367_v46  ;;  %v4377_v46 = vld [vmem:[#allocation151_spill] sm:$0xff]  ;;  %v4378_v36 = vld [vmem:[#allocation157_spill] sm:$0xff] }
 0x111   :  { %1940 = vmatprep.subr.bf16.mxu1 %v3399_v60  ;;  %v3434_v60 = vpack.c.bf16 %v4370_v45, %v4369_v42  ;;  %v3450_v42 = vpack.c.bf16 %v4378_v36, %v4377_v46  ;;  %v4380_v45 = vld [vmem:[#allocation21_spill] sm:$0xff]  ;;  %v3465_v46 = vpack.c.bf16 %v4383_v2, %v4382_v1  ;;  %v4385_v36 = vld [vmem:[#allocation26_spill] sm:$0xff] }
 0x112   :  { %v3461_v56 = vpack.c.bf16 %v4381_v52, %v4380_v45  ;;  %v4391_v45 = vld [vmem:[#allocation30_spill] sm:$0xff]  ;;  %v4392_v52 = vld [vmem:[#allocation32_spill] sm:$0xff]  ;;  %v4394_v2 = vld [vmem:[#allocation29_spill] sm:$0xff] }
 0x113   :  { %1878 = vmatpush1.bf16.msra.mxu0 %v3404_v58  ;;  %4371 = vst [vmem:[#allocation65_spill] sm:$0xff] %v3434_v60  ;;  %4379 = vst [vmem:[#allocation78_spill] sm:$0xff] %v3450_v42  ;;  %v3481_v1 = vpack.c.bf16 %v4392_v52, %v4391_v45  ;;  %v4403_v45 = vld [vmem:[#allocation38_spill] sm:$0xff]  ;;  %v4404_v52 = vld [vmem:[#allocation40_spill] sm:$0xff] }
 0x114   :  { %1880 = vmatprep.subr.bf16.mxu0 %v3409_v55  ;;  %1942 = vmatpush1.bf16.msra.mxu1 %v3414_v62  ;;  %4384 = vst [vmem:[#allocation84_spill] sm:$0xff] %v3465_v46 }
 0x115   :  { %1944 = vmatprep.subr.bf16.mxu1 %v3419_v40  ;;  %v4389_v40 = vld [vmem:[#allocation27_spill] sm:$0xff]  ;;  %4393 = vst [vmem:[#allocation80_spill] sm:$0xff] %v3481_v1 }
 0x117   :  { %1882 = vmatpush1.bf16.msra.mxu0 %v3424_v53 }
 0x118   :  { %1884 = vmatprep.subr.bf16.mxu0 %v3429_v50  ;;  %1946 = vmatpush1.bf16.msra.mxu1 %v3434_v60 }
 0x119   :  { %1948 = vmatprep.subr.bf16.mxu1 %v3439_v49  ;;  %v4386_v49 = vld [vmem:[#allocation28_spill] sm:$0xff] }
 0x11a   :  { %v3469_v60 = vpack.c.bf16 %v4386_v49, %v4385_v36  ;;  %v3485_v49 = vpack.c.bf16 %v4395_v16, %v4394_v2  ;;  %v4397_v36 = vld [vmem:[#allocation34_spill] sm:$0xff]  ;;  %v3501_v16 = vpack.c.bf16 %v4404_v52, %v4403_v45  ;;  %v4406_v2 = vld [vmem:[#allocation37_spill] sm:$0xff]  ;;  %v4419_v52 = vld [vmem:[#allocation43_spill] sm:$0xff] }
 0x11b   :  { %1886 = vmatpush1.bf16.msra.mxu0 %v3444_v22  ;;  %v4418_v45 = vld [vmem:[#allocation41_spill] sm:$0xff] }
 0x11c   :  { %1950 = vmatpush1.bf16.msra.mxu1 %v3450_v42  ;;  %4387 = vst [vmem:[#allocation67_spill] sm:$0xff] %v3469_v60  ;;  %1952 = vmatprep.subr.bf16.mxu0 %v3461_v56  ;;  %v4388_v42 = vld [vmem:[#allocation25_spill] sm:$0xff]  ;;  %4396 = vst [vmem:[#allocation86_spill] sm:$0xff] %v3485_v49 }
 0x11d   :  { %v3475_v62 = vpack.c.bf16 %v4389_v40, %v4388_v42  ;;  %v4400_v42 = vld [vmem:[#allocation33_spill] sm:$0xff]  ;;  %4405 = vst [vmem:[#allocation90_spill] sm:$0xff] %v3501_v16 }
 0x11e   :  { %734 = vmatmul.mubr.f32.vlgmr.msra.gmra.mrb[2].mxu0 %v4284_v13 }
 0x11f   :  { %805 = vmatmul.mubr.f32.vlgmr.msra.gmra.mrb[2].mxu1 %v4284_v13  ;;  %875 = vmatprep.mubr.f32.mxu0 %v4284_v13  ;;  %4390 = vst [vmem:[#allocation73_spill] sm:$0xff] %v3475_v62 }
 0x120   :  { %1001 = vmatprep.mubr.f32.mxu1 %v4284_v13  ;;  %1954 = vmatpush1.bf16.msra.mxu0 %v3465_v46  ;;  %v4398_v46 = vld [vmem:[#allocation36_spill] sm:$0xff] }
 0x121   :  { %1956 = vmatprep.subr.bf16.mxu0 %v3469_v60  ;;  %v3491_v40 = vpack.c.bf16 %v4398_v46, %v4397_v36  ;;  %v4401_v60 = vld [vmem:[#allocation35_spill] sm:$0xff]  ;;  %v4413_v36 = vld [vmem:[#allocation166_spill] sm:$0xff] }
 0x122   :  { %v3495_v61 = vpack.c.bf16 %v4401_v60, %v4400_v42  ;;  %v4412_v60 = vld [vmem:[#allocation163_spill] sm:$0xff] }
 0x123   :  { %4399 = vst [vmem:[#allocation77_spill] sm:$0xff] %v3491_v40  ;;  %v3514_v42 = vpack.c.bf16 %v4413_v36, %v4412_v60 }
 0x124   :  { %1958 = vmatpush1.bf16.msra.mxu0 %v3475_v62  ;;  %4402 = vst [vmem:[#allocation83_spill] sm:$0xff] %v3495_v61 }
 0x125   :  { %1960 = vmatprep.subr.bf16.mxu0 %v3481_v1  ;;  %v4407_v1 = vld [vmem:[#allocation39_spill] sm:$0xff]  ;;  %4414 = vst [vmem:[#allocation85_spill] sm:$0xff] %v3514_v42  ;;  %2016 = vmatprep.subr.bf16.mxu1 %v3514_v42 }
 0x126   :  { %v3505_v62 = vpack.c.bf16 %v4407_v1, %v4406_v2  ;;  %v3523_v1 = vpack.c.bf16 %v4419_v52, %v4418_v45  ;;  %v4421_v2 = vld [vmem:[#allocation169_spill] sm:$0xff]  ;;  %v4430_v45 = vld [vmem:[#allocation175_spill] sm:$0xff]  ;;  %v4431_v52 = vld [vmem:[#allocation178_spill] sm:$0xff] }
 0x128   :  { %1962 = vmatpush1.bf16.msra.mxu0 %v3485_v49  ;;  %4408 = vst [vmem:[#allocation96_spill] sm:$0xff] %v3505_v62  ;;  %v4409_v49 = vld [vmem:[#allocation42_spill] sm:$0xff]  ;;  %4420 = vst [vmem:[#allocation98_spill] sm:$0xff] %v3523_v1 }
 0x129   :  { %1964 = vmatprep.subr.bf16.mxu0 %v3491_v40  ;;  %v3509_v46 = vpack.c.bf16 %v4410_v57, %v4409_v49  ;;  %v4415_v40 = vld [vmem:[#allocation162_spill] sm:$0xff]  ;;  %v3527_v57 = vpack.c.bf16 %v4422_v44, %v4421_v2  ;;  %v4424_v49 = vld [vmem:[#allocation48_spill] sm:$0xff]  ;;  %v3543_v44 = vpack.c.bf16 %v4431_v52, %v4430_v45  ;;  %v4433_v2 = vld [vmem:[#allocation47_spill] sm:$0xff] }
 0x12a   :  { %v4442_v45 = vld [vmem:[#allocation57_spill] sm:$0xff]  ;;  %v4443_v52 = vld [vmem:[#allocation63_spill] sm:$0xff] }
 0x12b   :  { %4411 = vst [vmem:[#allocation79_spill] sm:$0xff] %v3509_v46  ;;  %4423 = vst [vmem:[#allocation89_spill] sm:$0xff] %v3527_v57 }
 0x12c   :  { %1966 = vmatpush1.bf16.msra.mxu0 %v3495_v61  ;;  %v4416_v61 = vld [vmem:[#allocation165_spill] sm:$0xff]  ;;  %4432 = vst [vmem:[#allocation108_spill] sm:$0xff] %v3543_v44 }
 0x12d   :  { %1968 = vmatprep.subr.bf16.mxu0 %v3501_v16  ;;  %v3518_v48 = vpack.c.bf16 %v4416_v61, %v4415_v40  ;;  %v4425_v16 = vld [vmem:[#allocation52_spill] sm:$0xff]  ;;  %v4428_v40 = vld [vmem:[#allocation171_spill] sm:$0xff] }
 0x12e   :  { %v3532_v60 = vpack.c.bf16 %v4425_v16, %v4424_v49  ;;  %v4427_v61 = vld [vmem:[#allocation168_spill] sm:$0xff]  ;;  %v4436_v49 = vld [vmem:[#allocation58_spill] sm:$0xff] }
 0x12f   :  { %4417 = vst [vmem:[#allocation92_spill] sm:$0xff] %v3518_v48  ;;  %2018 = vmatpush1.bf16.msra.mxu1 %v3518_v48  ;;  %v3538_v36 = vpack.c.bf16 %v4428_v40, %v4427_v61  ;;  %v4439_v61 = vld [vmem:[#allocation174_spill] sm:$0xff]  ;;  %v4440_v40 = vld [vmem:[#allocation177_spill] sm:$0xff] }
 0x130   :  { %1970 = vmatpush1.bf16.msra.mxu0 %v3505_v62  ;;  %4426 = vst [vmem:[#allocation95_spill] sm:$0xff] %v3532_v60  ;;  %2020 = vmatprep.subr.bf16.mxu1 %v3527_v57  ;;  %v4437_v62 = vld [vmem:[#allocation64_spill] sm:$0xff]  ;;  %v3558_v57 = vpack.c.bf16 %v4440_v40, %v4439_v61  ;;  %v4449_v61 = vld [vmem:[#allocation75_spill] sm:$0xff] }
 0x131   :  { %1972 = vmatprep.subr.bf16.mxu0 %v3509_v46  ;;  %4429 = vst [vmem:[#allocation102_spill] sm:$0xff] %v3538_v36  ;;  %v4434_v46 = vld [vmem:[#allocation51_spill] sm:$0xff]  ;;  %v3553_v48 = vpack.c.bf16 %v4437_v62, %v4436_v49  ;;  %v4448_v49 = vld [vmem:[#allocation69_spill] sm:$0xff] }
 0x132   :  { %v3548_v16 = vpack.c.bf16 %v4434_v46, %v4433_v2  ;;  %4441 = vst [vmem:[#allocation104_spill] sm:$0xff] %v3558_v57  ;;  %v3564_v46 = vpack.c.bf16 %v4443_v52, %v4442_v45  ;;  %v4445_v2 = vld [vmem:[#allocation70_spill] sm:$0xff]  ;;  %v3575_v40 = vpack.c.bf16 %v4449_v61, %v4448_v49  ;;  %v4454_v52 = vld [vmem:[#allocation81_spill] sm:$0xff] }
 0x133   :  { %4438 = vst [vmem:[#allocation97_spill] sm:$0xff] %v3553_v48  ;;  %2022 = vmatpush1.bf16.msra.mxu1 %v3538_v36  ;;  %v4460_v61 = vld [vmem:[#allocation93_spill] sm:$0xff] }
 0x134   :  { %1974 = vmatpush1.bf16.msra.mxu0 %v3523_v1  ;;  %4435 = vst [vmem:[#allocation91_spill] sm:$0xff] %v3548_v16  ;;  %2024 = vmatprep.subr.bf16.mxu1 %v3543_v44  ;;  %4444 = vst [vmem:[#allocation110_spill] sm:$0xff] %v3564_v46  ;;  %v4452_v1 = vld [vmem:[#allocation88_spill] sm:$0xff] }
 0x135   :  { %1976 = vmatprep.subr.bf16.mxu0 %v3532_v60  ;;  %v4446_v60 = vld [vmem:[#allocation76_spill] sm:$0xff]  ;;  %4450 = vst [vmem:[#allocation107_spill] sm:$0xff] %v3575_v40 }
 0x136   :  { %v3569_v62 = vpack.c.bf16 %v4446_v60, %v4445_v2  ;;  %v4457_v2 = vld [vmem:[#allocation94_spill] sm:$0xff] }
 0x137   :  { %2026 = vmatpush1.bf16.msra.mxu1 %v3558_v57 }
 0x138   :  { %1978 = vmatpush1.bf16.msra.mxu0 %v3548_v16  ;;  %4447 = vst [vmem:[#allocation101_spill] sm:$0xff] %v3569_v62  ;;  %v4451_v16 = vld [vmem:[#allocation82_spill] sm:$0xff] }
 0x139   :  { %1980 = vmatprep.subr.bf16.mxu0 %v3553_v48  ;;  %v3580_v45 = vpack.c.bf16 %v4452_v1, %v4451_v16  ;;  %v4455_v48 = vld [vmem:[#allocation87_spill] sm:$0xff]  ;;  %v4463_v1 = vld [vmem:[#allocation181_spill] sm:$0xff]  ;;  %v4464_v16 = vld [vmem:[#allocation184_spill] sm:$0xff] }
 0x13a   :  { %v3585_v60 = vpack.c.bf16 %v4455_v48, %v4454_v52  ;;  %v4466_v48 = vld [vmem:[#allocation180_spill] sm:$0xff]  ;;  %v4467_v52 = vld [vmem:[#allocation183_spill] sm:$0xff] }
 0x13b   :  { %4453 = vst [vmem:[#allocation114_spill] sm:$0xff] %v3580_v45 }
 0x13c   :  { %1982 = vmatpush1.bf16.msra.mxu0 %v3564_v46  ;;  %4456 = vst [vmem:[#allocation120_spill] sm:$0xff] %v3585_v60  ;;  %v4458_v46 = vld [vmem:[#allocation100_spill] sm:$0xff] }
 0x13d   :  { %1984 = vmatprep.subr.bf16.mxu0 %v3569_v62  ;;  %v3591_v49 = vpack.c.bf16 %v4458_v46, %v4457_v2  ;;  %v4461_v62 = vld [vmem:[#allocation99_spill] sm:$0xff]  ;;  %v4469_v46 = vld [vmem:[#allocation106_spill] sm:$0xff]  ;;  %v4470_v2 = vld [vmem:[#allocation112_spill] sm:$0xff] }
 0x13e   :  { %v3595_v57 = vpack.c.bf16 %v4461_v62, %v4460_v61  ;;  %v4472_v62 = vld [vmem:[#allocation105_spill] sm:$0xff]  ;;  %v4473_v61 = vld [vmem:[#allocation111_spill] sm:$0xff] }
 0x13f   :  { %4459 = vst [vmem:[#allocation103_spill] sm:$0xff] %v3591_v49 }
 0x140   :  { %1986 = vmatpush1.bf16.msra.mxu0 %v3575_v40  ;;  %4462 = vst [vmem:[#allocation109_spill] sm:$0xff] %v3595_v57  ;;  %v3600_v40 = vpack.c.bf16 %v4464_v16, %v4463_v1  ;;  %v4475_v1 = vld [vmem:[#allocation187_spill] sm:$0xff]  ;;  %v4476_v16 = vld [vmem:[#allocation190_spill] sm:$0xff] }
 0x141   :  { %1988 = vmatprep.subr.bf16.mxu0 %v3580_v45  ;;  %v3605_v45 = vpack.c.bf16 %v4467_v52, %v4466_v48  ;;  %v4478_v48 = vld [vmem:[#allocation186_spill] sm:$0xff]  ;;  %v4479_v52 = vld [vmem:[#allocation189_spill] sm:$0xff] }
 0x142   :  { %4465 = vst [vmem:[#allocation116_spill] sm:$0xff] %v3600_v40  ;;  %2028 = vmatprep.subr.bf16.mxu1 %v3600_v40  ;;  %v3625_v40 = vpack.c.bf16 %v4479_v52, %v4478_v48  ;;  %v4490_v48 = vld [vmem:[#allocation192_spill] sm:$0xff]  ;;  %v4491_v52 = vld [vmem:[#allocation195_spill] sm:$0xff] }
 0x143   :  { %4468 = vst [vmem:[#allocation122_spill] sm:$0xff] %v3605_v45  ;;  %2030 = vmatpush1.bf16.msra.mxu1 %v3605_v45 }
 0x144   :  { %1990 = vmatpush1.bf16.msra.mxu0 %v3585_v60  ;;  %v3610_v60 = vpack.c.bf16 %v4470_v2, %v4469_v46  ;;  %4480 = vst [vmem:[#allocation132_spill] sm:$0xff] %v3625_v40  ;;  %v4481_v46 = vld [vmem:[#allocation118_spill] sm:$0xff]  ;;  %v4482_v2 = vld [vmem:[#allocation124_spill] sm:$0xff] }
 0x145   :  { %1992 = vmatprep.subr.bf16.mxu0 %v3591_v49  ;;  %v3615_v49 = vpack.c.bf16 %v4473_v61, %v4472_v62  ;;  %v3630_v45 = vpack.c.bf16 %v4482_v2, %v4481_v46  ;;  %v4484_v62 = vld [vmem:[#allocation117_spill] sm:$0xff]  ;;  %v4485_v61 = vld [vmem:[#allocation123_spill] sm:$0xff]  ;;  %v4493_v46 = vld [vmem:[#allocation130_spill] sm:$0xff] }
 0x146   :  { %4471 = vst [vmem:[#allocation113_spill] sm:$0xff] %v3610_v60  ;;  %v4494_v2 = vld [vmem:[#allocation136_spill] sm:$0xff] }
 0x147   :  { %4474 = vst [vmem:[#allocation119_spill] sm:$0xff] %v3615_v49  ;;  %4483 = vst [vmem:[#allocation115_spill] sm:$0xff] %v3630_v45 }
 0x148   :  { %1994 = vmatpush1.bf16.msra.mxu0 %v3595_v57  ;;  %v3620_v57 = vpack.c.bf16 %v4476_v16, %v4475_v1  ;;  %v4487_v1 = vld [vmem:[#allocation193_spill] sm:$0xff]  ;;  %v4488_v16 = vld [vmem:[#allocation196_spill] sm:$0xff] }
 0x149   :  { %1996 = vmatprep.subr.bf16.mxu0 %v3610_v60  ;;  %v3635_v60 = vpack.c.bf16 %v4485_v61, %v4484_v62  ;;  %v4496_v62 = vld [vmem:[#allocation129_spill] sm:$0xff]  ;;  %v4497_v61 = vld [vmem:[#allocation135_spill] sm:$0xff] }
 0x14a   :  { %4477 = vst [vmem:[#allocation126_spill] sm:$0xff] %v3620_v57  ;;  %2032 = vmatprep.subr.bf16.mxu1 %v3620_v57  ;;  %v3645_v57 = vpack.c.bf16 %v4491_v52, %v4490_v48  ;;  %v4502_v48 = vld [vmem:[#allocation198_spill] sm:$0xff]  ;;  %v4503_v52 = vld [vmem:[#allocation201_spill] sm:$0xff] }
 0x14b   :  { %2034 = vmatpush1.bf16.msra.mxu1 %v3625_v40  ;;  %4486 = vst [vmem:[#allocation121_spill] sm:$0xff] %v3635_v60  ;;  %v3650_v40 = vpack.c.bf16 %v4494_v2, %v4493_v46  ;;  %v4505_v46 = vld [vmem:[#allocation142_spill] sm:$0xff]  ;;  %v4506_v2 = vld [vmem:[#allocation148_spill] sm:$0xff] }
 0x14c   :  { %1998 = vmatpush1.bf16.msra.mxu0 %v3615_v49  ;;  %v3640_v49 = vpack.c.bf16 %v4488_v16, %v4487_v1  ;;  %4492 = vst [vmem:[#allocation134_spill] sm:$0xff] %v3645_v57  ;;  %v4499_v1 = vld [vmem:[#allocation199_spill] sm:$0xff]  ;;  %v4500_v16 = vld [vmem:[#allocation202_spill] sm:$0xff] }
 0x14d   :  { %2000 = vmatprep.subr.bf16.mxu0 %v3630_v45  ;;  %4495 = vst [vmem:[#allocation125_spill] sm:$0xff] %v3650_v40  ;;  %v3655_v45 = vpack.c.bf16 %v4497_v61, %v4496_v62  ;;  %v4508_v62 = vld [vmem:[#allocation141_spill] sm:$0xff]  ;;  %v4509_v61 = vld [vmem:[#allocation147_spill] sm:$0xff] }
 0x14e   :  { %4489 = vst [vmem:[#allocation128_spill] sm:$0xff] %v3640_v49  ;;  %2036 = vmatprep.subr.bf16.mxu1 %v3640_v49  ;;  %v3665_v49 = vpack.c.bf16 %v4503_v52, %v4502_v48  ;;  %v4514_v48 = vld [vmem:[#allocation204_spill] sm:$0xff]  ;;  %v4515_v52 = vld [vmem:[#allocation207_spill] sm:$0xff] }
 0x14f   :  { %2038 = vmatpush1.bf16.msra.mxu1 %v3645_v57  ;;  %4498 = vst [vmem:[#allocation131_spill] sm:$0xff] %v3655_v45  ;;  %v3670_v57 = vpack.c.bf16 %v4506_v2, %v4505_v46  ;;  %v4517_v46 = vld [vmem:[#allocation154_spill] sm:$0xff]  ;;  %v4518_v2 = vld [vmem:[#allocation160_spill] sm:$0xff] }
 0x150   :  { %2002 = vmatpush1.bf16.msra.mxu0 %v3635_v60  ;;  %v3660_v60 = vpack.c.bf16 %v4500_v16, %v4499_v1  ;;  %4504 = vst [vmem:[#allocation144_spill] sm:$0xff] %v3665_v49  ;;  %v4511_v1 = vld [vmem:[#allocation205_spill] sm:$0xff]  ;;  %v4512_v16 = vld [vmem:[#allocation208_spill] sm:$0xff] }
 0x151   :  { %2004 = vmatprep.subr.bf16.mxu0 %v3650_v40  ;;  %4507 = vst [vmem:[#allocation127_spill] sm:$0xff] %v3670_v57  ;;  %v3675_v40 = vpack.c.bf16 %v4509_v61, %v4508_v62  ;;  %v4520_v62 = vld [vmem:[#allocation153_spill] sm:$0xff]  ;;  %v4521_v61 = vld [vmem:[#allocation159_spill] sm:$0xff] }
 0x152   :  { %4501 = vst [vmem:[#allocation138_spill] sm:$0xff] %v3660_v60  ;;  %2040 = vmatprep.subr.bf16.mxu1 %v3660_v60  ;;  %v3685_v60 = vpack.c.bf16 %v4515_v52, %v4514_v48  ;;  %v4523_v48 = vld [vmem:[#allocation22_spill] sm:$0xff] }
 0x153   :  { %2042 = vmatpush1.bf16.msra.mxu1 %v3665_v49  ;;  %4510 = vst [vmem:[#allocation133_spill] sm:$0xff] %v3675_v40  ;;  %v3690_v49 = vpack.c.bf16 %v4518_v2, %v4517_v46  ;;  %v3702_v52 = vsub.s32 0, %v4523_v48  ;;  %v455_v46 = vld [vmem:[#allocation9] sm:$0x7]  ;;  %v3705_v2 = vsub.s32 1, %v4523_v48  ;;  %vm1099_vm4 = vcmp.eq.s32.totalorder %v4523_v48, 0 }
 0x154   :  { %2006 = vmatpush1.bf16.msra.mxu0 %v3655_v45  ;;  %v3680_v45 = vpack.c.bf16 %v4512_v16, %v4511_v1  ;;  %4516 = vst [vmem:[#allocation146_spill] sm:$0xff] %v3685_v60  ;;  %v2469_v1 = vmov 1983009808   ;;  %vm1520_vm5 = vcmp.eq.s32.totalorder %v4523_v48, 1 }
 0x155   :  { %2008 = vmatprep.subr.bf16.mxu0 %v3670_v57  ;;  %4519 = vst [vmem:[#allocation137_spill] sm:$0xff] %v3690_v49  ;;  %v3695_v57 = vpack.c.bf16 %v4521_v61, %v4520_v62  ;;  %v622_v16 = vunpack.c.l.s4 %v2469_v1  ;;  %v3708_v62 = vsub.s32 2, %v4523_v48  ;;  %v460_v1 = vrot.slane %v455_v46, %v3702_v52 }
 0x156   :  { %4513 = vst [vmem:[#allocation140_spill] sm:$0xff] %v3680_v45  ;;  %2044 = vmatprep.subr.bf16.mxu1 %v3680_v45 }
 0x157   :  { %2046 = vmatpush1.bf16.msra.mxu1 %v3685_v60  ;;  %4522 = vst [vmem:[#allocation143_spill] sm:$0xff] %v3695_v57  ;;  %v623_v61 = vunpack.c.0.s8 %v622_v16 }
 0x158   :  { %2010 = vmatpush1.bf16.msra.mxu0 %v3675_v40  ;;  %2047 = vmatprep.subr.bf16.mxu1 %v4283_v34 }
 0x159   :  { %2012 = vmatprep.subr.bf16.mxu0 %v3690_v49  ;;  %v3718_v40 = vsub.s32 %v623_v61, %v4523_v48  ;;  %v4527_v61 = vld [vmem:[#allocation170_spill] sm:$0xff] }
 0x15c   :  { %2014 = vmatpush1.bf16.msra.mxu0 %v3695_v57  ;;  %v468_v57 = vrot.slane %v455_v46, %v3708_v62 }
 0x15d   :  { %2072 = vmatprep.subr.bf16.mxu0 %v3134_v27  ;;  %v464_v27 = vrot.slane %v455_v46, %v3705_v2 }
 0x15f   :  { %876 = vmatmul.mubr.f32.vlgmr.msra.gmra.mrb[4].mxu0 %v4284_v13 }
 0x160   :  { %2074 = vmatpush1.bf16.msra.mxu0 %v3143_v39 }
 0x161   :  { %2076 = vmatprep.subr.bf16.mxu0 %v3148_v4 }
 0x164   :  { %2078 = vmatpush1.bf16.msra.mxu0 %v3162_v3 }
 0x165   :  { %2080 = vmatprep.subr.bf16.mxu0 %v3167_v6  ;;  %v2470_v6 = vmov 1966171168  }
 0x168   :  { %2082 = vmatpush1.bf16.msra.mxu0 %v3184_v14  ;;  %v887_v14 = vunpack.c.l.s4 %v2470_v6 }
 0x169   :  { %2084 = vmatprep.subr.bf16.mxu0 %v3189_v17  ;;  %v4524_v17 = vld [vmem:[#allocation161_spill] sm:$0xff] }
 0x16c   :  { %2086 = vmatpush1.bf16.msra.mxu0 %v3204_v20  ;;  %v3753_v20 = vrot.slane %v4524_v17, %v3702_v52 }
 0x16d   :  { %2088 = vmatprep.subr.bf16.mxu0 %v3209_v23  ;;  %v3757_v23 = vrot.slane %v4524_v17, %v3705_v2 }
 0x170   :  { %2090 = vmatpush1.bf16.msra.mxu0 %v3224_v26  ;;  %v888_v26 = vunpack.c.0.s8 %v887_v14  ;;  %v4533_v14 = vld [vmem:[#allocation188_spill] sm:$0xff] }
 0x171   :  { %2092 = vmatprep.subr.bf16.mxu0 %v3229_v28 }
 0x174   :  { %2094 = vmatpush1.bf16.msra.mxu0 %v3244_v31 }
 0x175   :  { %2096 = vmatprep.subr.bf16.mxu0 %v3249_v32 }
 0x178   :  { %2098 = vmatpush1.bf16.msra.mxu0 %v3264_v38 }
 0x179   :  { %2100 = vmatprep.subr.bf16.mxu0 %v3269_v41 }
 0x17c   :  { %2102 = vmatpush1.bf16.msra.mxu0 %v3284_v51  ;;  %v3762_v51 = vsub.s32 %v888_v26, %v4523_v48  ;;  %v4534_v26 = vld [vmem:[#allocation191_spill] sm:$0xff] }
 0x17d   :  { %2104 = vmatprep.subr.bf16.mxu0 %v3289_v54 }
 0x180   :  { %2106 = vmatpush1.bf16.msra.mxu0 %v3304_v0 }
 0x181   :  { %2108 = vmatprep.subr.bf16.mxu0 %v3309_v5 }
 0x184   :  { %2110 = vmatpush1.bf16.msra.mxu0 %v3324_v21 }
 0x185   :  { %2112 = vmatprep.subr.bf16.mxu0 %v3329_v43 }
 0x188   :  { %2114 = vmatpush1.bf16.msra.mxu0 %v3344_v59 }
 0x189   :  { %2116 = vmatprep.subr.bf16.mxu0 %v3349_v63 }
 0x18c   :  { %2118 = vmatpush1.bf16.msra.mxu0 %v3364_v33 }
 0x18d   :  { %2120 = vmatprep.subr.bf16.mxu0 %v3369_v47 }
 0x190   :  { %2122 = vmatpush1.bf16.msra.mxu0 %v3384_v8 }
 0x191   :  { %2124 = vmatprep.subr.bf16.mxu0 %v3389_v37 }
 0x194   :  { %2126 = vmatpush1.bf16.msra.mxu0 %v3404_v58  ;;  %v3770_v58 = vrot.slane %v4524_v17, %v3708_v62 }
 0x195   :  { %2128 = vmatprep.subr.bf16.mxu0 %v3409_v55 }
 0x198   :  { %2130 = vmatpush1.bf16.msra.mxu0 %v3424_v53 }
 0x199   :  { %2132 = vmatprep.subr.bf16.mxu0 %v3429_v50 }
 0x19c   :  { %2134 = vmatpush1.bf16.msra.mxu0 %v3444_v22 }
 0x19d   :  { %2200 = vmatprep.subr.bf16.mxu0 %v3461_v56 }
 0x1b1   :  { %v542_v49 = vpop.f32.mrb[0].mxu0 }
 0x1b2   :  { %v543_v60 = vadd.f32 %v542_v49, %v460_v1  ;;  %v544_v45 = vpop.f32.mrb[1].mxu0  ;;  %v613_v39 = vpop.f32.mrb[0].mxu1  ;;  %v4528_v1 = vld [vmem:[#allocation173_spill] sm:$0xff] }
 0x1b3   :  { %v545_v16 = vadd.f32 %v544_v45, %v464_v27  ;;  %v614_v44 = vadd.f32 %v613_v39, %v468_v57  ;;  %v1738_v4 = vpop.f32.mrb[1].mxu1  ;;  %v4526_v45 = vld [vmem:[#allocation167_spill] sm:$0xff]  ;;  %v3783_v27 = vpack.c.bf16 %v4528_v1, %v4527_v61  ;;  %v4529_v39 = vld [vmem:[#allocation176_spill] sm:$0xff] }
 0x1b5   :  { %v620_v36 = vcombine.low %v543_v60, %v545_v16  ;;  %v634_v42 = vrot.slane %v614_v44, %v3718_v40  ;;  %v4525_v44 = vld [vmem:[#allocation164_spill] sm:$0xff]  ;;  %v4530_v16 = vld [vmem:[#allocation179_spill] sm:$0xff] }
 0x1b6   :  { %v3775_v60 = vpack.c.bf16 %v4526_v45, %v4525_v44  ;;  %v3791_v4 = vpack.c.bf16 %v4530_v16, %v4529_v39  ;;  %v4561_v44 = vld [vmem:[#allocation210_spill] sm:$0xff] }
 0x1b7   :  { %v627_v3 = vrot.slane %v620_v36, %v3718_v40  ;;  %v3869_v45 = vrot.slane %v4561_v44, %v3702_v52  ;;  %v3873_v61 = vrot.slane %v4561_v44, %v3705_v2 }
 0x1b9   :  { %v635_v46 = vcombine.low %v627_v3, %v634_v42  ;;  %v4531_v3 = vld [vmem:[#allocation182_spill] sm:$0xff] }
 0x1bb   :  { %637 = vst [vmem:[#allocation3] sm:$0x3f] %v635_v46  ;;  %v4532_v46 = vld [vmem:[#allocation185_spill] sm:$0xff] }
 0x1bc   :  { %v3797_v6 = vpack.c.bf16 %v4532_v46, %v4531_v3 }
 0x1c2   :  { %v882_v21 = vld [vmem:[#allocation3] ss:$2 sm:$0x7] }
 0x1c3   :  { %v910_v8 = vrot.slane %v882_v21, 2 }
 0x1f1   :  { %v735_v28 = vpop.f32.mrb[2].mxu0 }
 0x1f2   :  { %v736_v31 = vadd.f32 %v735_v28, %v3753_v20  ;;  %v737_v32 = vpop.f32.mrb[3].mxu0  ;;  %v806_v38 = vpop.f32.mrb[2].mxu1  ;;  %v3803_v28 = vpack.c.bf16 %v4534_v26, %v4533_v14 }
 0x1f3   :  { %v738_v41 = vadd.f32 %v737_v32, %v3757_v23  ;;  %v3764_v54 = vpop.f32.mrb[3].mxu1  ;;  %v807_v33 = vadd.f32 %v806_v38, %v3770_v58  ;;  %v4536_v32 = vld [vmem:[#allocation197_spill] sm:$0xff] }
 0x1f5   :  { %v885_v0 = vcombine.low %v736_v31, %v738_v41  ;;  %v4535_v31 = vld [vmem:[#allocation194_spill] sm:$0xff]  ;;  %v4537_v41 = vld [vmem:[#allocation200_spill] sm:$0xff] }
 0x1f6   :  { %v3809_v38 = vpack.c.bf16 %v4536_v32, %v4535_v31 }
 0x1f7   :  { %v892_v5 = vrot.slane %v885_v0, %v3762_v51  ;;  %v4538_v0 = vld [vmem:[#allocation203_spill] sm:$0xff] }
 0x1f9   :  { %v899_v22 = vrot.slane %v892_v5, %v3762_v51  ;;  %v3815_v5 = vpack.c.bf16 %v4538_v0, %v4537_v41 }
 0x1fb   :  { %v901_v43 = vadd.f32 %v899_v22, %v882_v21  ;;  %v4539_v22 = vld [vmem:[#allocation206_spill] sm:$0xff]  ;;  %v4540_v21 = vld [vmem:[#allocation209_spill] sm:$0xff] }
 0x1fd   :  { %v1674_v53 = vmul.f32 -1.442695, %v901_v43  ;;  %v3821_v43 = vpack.c.bf16 %v4540_v21, %v4539_v22  ;;  %v661_v21 = vsub.s32 5, %v4523_v48 }
 0x1ff   :  { %2332 = vpow2.f32 %v1674_v53  ;;  %v4554_v53 = vld [vmem:[#allocation61_spill] sm:$0xff] }
 0x209   :  { %v2333_v59 = vpop.eup %2332 }
 0x20a   :  { %v905_v63 = vadd.f32 1.0, %v2333_v59 }
 0x20c   :  { %2334 = vrcp.f32 %v905_v63  ;;  %v4555_v63 = vld [vmem:[#allocation68_spill] sm:$0xff] }
 0x216   :  { %v2335_v47 = vpop.eup %2334 }
 0x217   :  { %v908_v55 = vmul.f32 %v2335_v47, %v807_v33  ;;  %v915_v50 = vrot.slane %v2335_v47, 1  ;;  %v4556_v33 = vld [vmem:[#allocation74_spill] sm:$0xff]  ;;  %v4557_v47 = vld [vmem:[#allocation65_spill] sm:$0xff] }
 0x219   :  { %v912_v37 = vadd.f32 %v910_v8, %v908_v55  ;;  %v917_v56 = vsub.f32 1.0, %v915_v50  ;;  %v919_v36 = vmul.f32 0.0, %v915_v50  ;;  %v4558_v55 = vld [vmem:[#allocation71_spill] sm:$0xff]  ;;  %v4559_v8 = vld [vmem:[#allocation78_spill] sm:$0xff] }
 0x21b   :  { %2336 = vtanh.f32 %v912_v37  ;;  %v4560_v37 = vld [vmem:[#allocation85_spill] sm:$0xff] }
 0x225   :  { %v2337_v42 = vpop.eup %2336 }
 0x226   :  { %v918_v57 = vmul.f32 %v2337_v42, %v917_v56  ;;  %v657_v56 = vsub.s32 4, %v4523_v48  ;;  %v653_v42 = vsub.s32 3, %v4523_v48 }
 0x228   :  { %v3777_v49 = vadd.f32 %v919_v36, %v918_v57  ;;  %v3862_v57 = vrot.slane %v4524_v17, %v657_v56  ;;  %v3865_v36 = vrot.slane %v4524_v17, %v653_v42  ;;  %v4569_v56 = vld [vmem:[#allocation108_spill] sm:$0xff]  ;;  %v4570_v42 = vld [vmem:[#allocation86_spill] sm:$0xff] }
 0x22a   :  { %1002 = vmatmul.mubr.f32.vlgmr.msra.gmra.mrb[4].mxu1 %v3777_v49  ;;  %v809_v16 = vadd.f32 %v3764_v54, %v3865_v36 }
 0x22b   :  { %2049 = vmatpush3.bf16.msra.mxu1 %v3775_v60  ;;  %1771 = vmatprep.mubr.msk.f32.mxu1 %vm2468_vm0, %v4284_v13 }
 0x22c   :  { %2050 = vmatprep.subr.bf16.mxu1 %v4283_v34 }
 0x22f   :  { %2052 = vmatpush3.bf16.msra.mxu1 %v3783_v27 }
 0x230   :  { %2053 = vmatprep.subr.bf16.mxu1 %v4283_v34 }
 0x232   :  { %v877_v59 = vpop.f32.mrb[4].mxu0 }
 0x233   :  { %2055 = vmatpush3.bf16.msra.mxu1 %v3791_v4  ;;  %v879_v50 = vpop.f32.mrb[5].mxu0  ;;  %v878_v39 = vadd.f32 %v877_v59, %v3862_v57 }
 0x234   :  { %2056 = vmatprep.subr.bf16.mxu1 %v4283_v34 }
 0x237   :  { %2058 = vmatpush3.bf16.msra.mxu1 %v3797_v6 }
 0x238   :  { %2059 = vmatprep.subr.bf16.mxu1 %v4283_v34 }
 0x23b   :  { %2061 = vmatpush3.bf16.msra.mxu1 %v3803_v28 }
 0x23c   :  { %2062 = vmatprep.subr.bf16.mxu1 %v4283_v34 }
 0x23f   :  { %2064 = vmatpush3.bf16.msra.mxu1 %v3809_v38 }
 0x240   :  { %2065 = vmatprep.subr.bf16.mxu1 %v4283_v34 }
 0x243   :  { %2067 = vmatpush3.bf16.msra.mxu1 %v3815_v5 }
 0x244   :  { %2068 = vmatprep.subr.bf16.mxu1 %v4283_v34 }
 0x247   :  { %2070 = vmatpush3.bf16.msra.mxu1 %v3821_v43 }
 0x248   :  { %2136 = vmatprep.subr.bf16.mxu1 %v3139_v15  ;;  %v4541_v15 = vld [vmem:[#allocation45_spill] sm:$0xff] }
 0x24a   :  { %1772 = vmatmul.mubr.f32.vlgmr.msra.gmra.mrb[6].mxu1 %v3777_v49 }
 0x24b   :  { %2138 = vmatpush1.bf16.msra.mxu1 %v3152_v9  ;;  %v4542_v9 = vld [vmem:[#allocation49_spill] sm:$0xff] }
 0x24c   :  { %2140 = vmatprep.subr.bf16.mxu1 %v3157_v7  ;;  %v4543_v7 = vld [vmem:[#allocation54_spill] sm:$0xff] }
 0x24f   :  { %2142 = vmatpush1.bf16.msra.mxu1 %v3172_v10  ;;  %v4544_v10 = vld [vmem:[#allocation60_spill] sm:$0xff] }
 0x250   :  { %2144 = vmatprep.subr.bf16.mxu1 %v3177_v11  ;;  %v4545_v11 = vld [vmem:[#allocation46_spill] sm:$0xff] }
 0x253   :  { %2146 = vmatpush1.bf16.msra.mxu1 %v3194_v18  ;;  %v4546_v18 = vld [vmem:[#allocation50_spill] sm:$0xff] }
 0x254   :  { %2148 = vmatprep.subr.bf16.mxu1 %v3199_v19  ;;  %v4547_v19 = vld [vmem:[#allocation56_spill] sm:$0xff] }
 0x257   :  { %2150 = vmatpush1.bf16.msra.mxu1 %v3214_v24  ;;  %v4548_v24 = vld [vmem:[#allocation62_spill] sm:$0xff] }
 0x258   :  { %2152 = vmatprep.subr.bf16.mxu1 %v3219_v25  ;;  %v4549_v25 = vld [vmem:[#allocation53_spill] sm:$0xff] }
 0x25b   :  { %2154 = vmatpush1.bf16.msra.mxu1 %v3234_v29  ;;  %v4550_v29 = vld [vmem:[#allocation59_spill] sm:$0xff] }
 0x25c   :  { %2156 = vmatprep.subr.bf16.mxu1 %v3239_v30  ;;  %v4551_v30 = vld [vmem:[#allocation66_spill] sm:$0xff] }
 0x25f   :  { %2158 = vmatpush1.bf16.msra.mxu1 %v3254_v35  ;;  %v4552_v35 = vld [vmem:[#allocation72_spill] sm:$0xff] }
 0x260   :  { %2160 = vmatprep.subr.bf16.mxu1 %v3259_v12  ;;  %v4553_v12 = vld [vmem:[#allocation55_spill] sm:$0xff] }
 0x263   :  { %2162 = vmatpush1.bf16.msra.mxu1 %v4541_v15  ;;  %v3882_v15 = vrot.slane %v4524_v17, %v661_v21  ;;  %v4584_v21 = vld [vmem:[#allocation134_spill] sm:$0xff] }
 0x264   :  { %2164 = vmatprep.subr.bf16.mxu1 %v4542_v9 }
 0x267   :  { %2166 = vmatpush1.bf16.msra.mxu1 %v4543_v7  ;;  %v880_v7 = vadd.f32 %v879_v50, %v3882_v15  ;;  %v4568_v50 = vld [vmem:[#allocation102_spill] sm:$0xff] }
 0x268   :  { %2168 = vmatprep.subr.bf16.mxu1 %v4544_v10  ;;  %v3887_v10 = vrot.slane %v4561_v44, %v3708_v62  ;;  %v4571_v44 = vld [vmem:[#allocation77_spill] sm:$0xff] }
 0x26b   :  { %2170 = vmatpush1.bf16.msra.mxu1 %v4545_v11 }
 0x26c   :  { %2172 = vmatprep.subr.bf16.mxu1 %v4546_v18 }
 0x26f   :  { %2174 = vmatpush1.bf16.msra.mxu1 %v4547_v19 }
 0x270   :  { %2176 = vmatprep.subr.bf16.mxu1 %v4548_v24 }
 0x273   :  { %2178 = vmatpush1.bf16.msra.mxu1 %v4549_v25 }
 0x274   :  { %2180 = vmatprep.subr.bf16.mxu1 %v4550_v29 }
 0x277   :  { %2182 = vmatpush1.bf16.msra.mxu1 %v4551_v30 }
 0x278   :  { %2184 = vmatprep.subr.bf16.mxu1 %v4552_v35 }
 0x27b   :  { %2186 = vmatpush1.bf16.msra.mxu1 %v4553_v12 }
 0x27c   :  { %2188 = vmatprep.subr.bf16.mxu1 %v4554_v53 }
 0x27f   :  { %2190 = vmatpush1.bf16.msra.mxu1 %v4555_v63  ;;  %v4562_v63 = vld [vmem:[#allocation84_spill] sm:$0xff] }
 0x280   :  { %2192 = vmatprep.subr.bf16.mxu1 %v4556_v33  ;;  %v4563_v33 = vld [vmem:[#allocation67_spill] sm:$0xff] }
 0x283   :  { %2194 = vmatpush1.bf16.msra.mxu1 %v4557_v47  ;;  %v4564_v47 = vld [vmem:[#allocation92_spill] sm:$0xff] }
 0x284   :  { %2196 = vmatprep.subr.bf16.mxu1 %v4558_v55  ;;  %v4565_v55 = vld [vmem:[#allocation89_spill] sm:$0xff] }
 0x287   :  { %2198 = vmatpush1.bf16.msra.mxu1 %v4559_v8  ;;  %v4566_v8 = vld [vmem:[#allocation73_spill] sm:$0xff] }
 0x288   :  { %2264 = vmatprep.subr.bf16.mxu1 %v4560_v37  ;;  %v4567_v37 = vld [vmem:[#allocation80_spill] sm:$0xff] }
 0x2fd   :  { %v1003_v1 = vpop.f32.mrb[4].mxu1 }
 0x2fe   :  { %v1004_v3 = vadd.f32 %v1003_v1, %v3869_v45  ;;  %v1005_v46 = vpop.f32.mrb[5].mxu1  ;;  %v4572_v1 = vld [vmem:[#allocation104_spill] sm:$0xff] }
 0x2ff   :  { %v1006_v14 = vadd.f32 %v1005_v46, %v3873_v61  ;;  %v4576_v46 = vld [vmem:[#allocation122_spill] sm:$0xff] }
 0x300   :  { %v1078_v26 = vadd.f32 %v1004_v3, %v809_v16  ;;  %v4574_v16 = vld [vmem:[#allocation83_spill] sm:$0xff]  ;;  %v4575_v3 = vld [vmem:[#allocation90_spill] sm:$0xff] }
 0x301   :  { %v1079_v31 = vadd.f32 %v1006_v14, %v878_v39  ;;  %v4573_v39 = vld [vmem:[#allocation116_spill] sm:$0xff]  ;;  %v4577_v14 = vld [vmem:[#allocation126_spill] sm:$0xff] }
 0x302   :  { %v1675_v32 = vmul.f32 -1.442695, %v1078_v26  ;;  %v4578_v26 = vld [vmem:[#allocation96_spill] sm:$0xff] }
 0x303   :  { %v1676_v41 = vmul.f32 -1.442695, %v1079_v31  ;;  %v4579_v31 = vld [vmem:[#allocation79_spill] sm:$0xff] }
 0x304   :  { %2338 = vpow2.f32 %v1675_v32  ;;  %v4580_v32 = vld [vmem:[#allocation132_spill] sm:$0xff] }
 0x305   :  { %2340 = vpow2.f32 %v1676_v41  ;;  %v4581_v41 = vld [vmem:[#allocation128_spill] sm:$0xff] }
 0x30e   :  { %v2339_v0 = vpop.eup %2338 }
 0x30f   :  { %v1086_v22 = vadd.f32 1.0, %v2339_v0  ;;  %v2341_v54 = vpop.eup %2340  ;;  %v4582_v0 = vld [vmem:[#allocation98_spill] sm:$0xff] }
 0x310   :  { %v1087_v9 = vadd.f32 1.0, %v2341_v54  ;;  %v4585_v54 = vld [vmem:[#allocation138_spill] sm:$0xff] }
 0x311   :  { %2342 = vrcp.f32 %v1086_v22  ;;  %v4583_v22 = vld [vmem:[#allocation95_spill] sm:$0xff] }
 0x312   :  { %2344 = vrcp.f32 %v1087_v9  ;;  %v4586_v9 = vld [vmem:[#allocation91_spill] sm:$0xff] }
 0x31b   :  { %v2343_v11 = vpop.eup %2342 }
 0x31c   :  { %v1092_v18 = vmul.f32 %v2343_v11, %v880_v7  ;;  %v2345_v30 = vpop.eup %2344  ;;  %v4587_v7 = vld [vmem:[#allocation97_spill] sm:$0xff]  ;;  %v4588_v11 = vld [vmem:[#allocation144_spill] sm:$0xff] }
 0x31d   :  { %v1074_v19 = vpop.f32.mrb[6].mxu1  ;;  %v1095_v17 = vsub.f32 1.0, %v2345_v30  ;;  %v1097_v53 = vmul.f32 0.0, %v2345_v30  ;;  %v4594_v30 = vld [vmem:[#allocation114_spill] sm:$0xff] }
 0x31e   :  { %v1075_v24 = vadd.f32 %v1074_v19, %v3887_v10  ;;  %v1773_v25 = vpop.f32.mrb[7].mxu1  ;;  %v4590_v19 = vld [vmem:[#allocation110_spill] sm:$0xff] }
 0x31f   :  { %v4592_v25 = vld [vmem:[#allocation146_spill] sm:$0xff] }
 0x320   :  { %v1093_v29 = vadd.f32 %v1092_v18, %v1075_v24  ;;  %v4589_v18 = vld [vmem:[#allocation140_spill] sm:$0xff]  ;;  %v4591_v24 = vld [vmem:[#allocation101_spill] sm:$0xff] }
 0x322   :  { %2346 = vtanh.f32 %v1093_v29  ;;  %v4593_v29 = vld [vmem:[#allocation107_spill] sm:$0xff] }
 0x32c   :  { %v2347_v35 = vpop.eup %2346 }
 0x32d   :  { %v1096_v12 = vmul.f32 %v2347_v35, %v1095_v17  ;;  %v4595_v17 = vld [vmem:[#allocation120_spill] sm:$0xff]  ;;  %v4596_v35 = vld [vmem:[#allocation103_spill] sm:$0xff] }
 0x32f   :  { %v3890_v59 = vadd.f32 %v1097_v53, %v1096_v12  ;;  %v4597_v12 = vld [vmem:[#allocation109_spill] sm:$0xff] }
 0x330   :  { %v4598_v53 = vld [vmem:[#allocation113_spill] sm:$0xff] }
 0x331   :  { %1169 = vmatprep.mubr.f32.mxu0 %v3890_v59  ;;  %1240 = vmatprep.mubr.f32.mxu1 %v3890_v59 }
 0x332   :  { %1170 = vmatmul.mubr.f32.vlgmr.msra.gmra.mrb[6].mxu0 %v3777_v49  ;;  %1241 = vmatmul.mubr.f32.vlgmr.msra.gmra.mrb[8].mxu1 %v3777_v49 }
 0x333   :  { %2202 = vmatpush1.bf16.msra.mxu0 %v4562_v63  ;;  %1311 = vmatprep.mubr.f32.mxu0 %v3890_v59  ;;  %v4599_v63 = vld [vmem:[#allocation119_spill] sm:$0xff] }
 0x334   :  { %2204 = vmatprep.subr.bf16.mxu0 %v4563_v33  ;;  %2266 = vmatpush1.bf16.msra.mxu1 %v4564_v47  ;;  %v4600_v33 = vld [vmem:[#allocation115_spill] sm:$0xff]  ;;  %v4601_v47 = vld [vmem:[#allocation121_spill] sm:$0xff] }
 0x335   :  { %2268 = vmatprep.subr.bf16.mxu1 %v4565_v55  ;;  %1422 = vmatprep.mubr.f32.mxu1 %v4284_v13  ;;  %v4602_v55 = vld [vmem:[#allocation125_spill] sm:$0xff] }
 0x337   :  { %2206 = vmatpush1.bf16.msra.mxu0 %v4566_v8  ;;  %v4603_v8 = vld [vmem:[#allocation131_spill] sm:$0xff] }
 0x338   :  { %2208 = vmatprep.subr.bf16.mxu0 %v4567_v37  ;;  %2270 = vmatpush1.bf16.msra.mxu1 %v4568_v50  ;;  %v4604_v37 = vld [vmem:[#allocation127_spill] sm:$0xff]  ;;  %v4605_v50 = vld [vmem:[#allocation133_spill] sm:$0xff] }
 0x339   :  { %2272 = vmatprep.subr.bf16.mxu1 %v4569_v56  ;;  %v4606_v56 = vld [vmem:[#allocation137_spill] sm:$0xff] }
 0x33b   :  { %2210 = vmatpush1.bf16.msra.mxu0 %v4570_v42  ;;  %v4607_v42 = vld [vmem:[#allocation143_spill] sm:$0xff] }
 0x33c   :  { %2212 = vmatprep.subr.bf16.mxu0 %v4571_v44  ;;  %2274 = vmatpush1.bf16.msra.mxu1 %v4572_v1 }
 0x33d   :  { %2276 = vmatprep.subr.bf16.mxu1 %v4573_v39 }
 0x33f   :  { %2214 = vmatpush1.bf16.msra.mxu0 %v4574_v16 }
 0x340   :  { %2216 = vmatprep.subr.bf16.mxu0 %v4575_v3  ;;  %2278 = vmatpush1.bf16.msra.mxu1 %v4576_v46 }
 0x341   :  { %2280 = vmatprep.subr.bf16.mxu1 %v4577_v14 }
 0x343   :  { %2218 = vmatpush1.bf16.msra.mxu0 %v4578_v26 }
 0x344   :  { %2220 = vmatprep.subr.bf16.mxu0 %v4579_v31  ;;  %2282 = vmatpush1.bf16.msra.mxu1 %v4580_v32  ;;  %v1319_v32 = vld [vmem:[#allocation3 + $0x1] ss:$2 sm:$0x7] }
 0x345   :  { %2284 = vmatprep.subr.bf16.mxu1 %v4581_v41 }
 0x347   :  { %2222 = vmatpush1.bf16.msra.mxu0 %v4582_v0 }
 0x348   :  { %2224 = vmatprep.subr.bf16.mxu0 %v4583_v22  ;;  %2286 = vmatpush1.bf16.msra.mxu1 %v4584_v21 }
 0x349   :  { %2288 = vmatprep.subr.bf16.mxu1 %v4585_v54 }
 0x34b   :  { %2226 = vmatpush1.bf16.msra.mxu0 %v4586_v9 }
 0x34c   :  { %2228 = vmatprep.subr.bf16.mxu0 %v4587_v7  ;;  %2290 = vmatpush1.bf16.msra.mxu1 %v4588_v11  ;;  %v1347_v7 = vrot.slane %v1319_v32, 2 }
 0x34d   :  { %2292 = vmatprep.subr.bf16.mxu1 %v4589_v18 }
 0x34f   :  { %2230 = vmatpush1.bf16.msra.mxu0 %v4590_v19 }
 0x350   :  { %2232 = vmatprep.subr.bf16.mxu0 %v4591_v24  ;;  %2294 = vmatpush1.bf16.msra.mxu1 %v4592_v25 }
 0x351   :  { %2295 = vmatprep.subr.bf16.mxu1 %v4283_v34 }
 0x353   :  { %2234 = vmatpush1.bf16.msra.mxu0 %v4593_v29 }
 0x354   :  { %2236 = vmatprep.subr.bf16.mxu0 %v4594_v30 }
 0x357   :  { %2238 = vmatpush1.bf16.msra.mxu0 %v4595_v17 }
 0x358   :  { %2240 = vmatprep.subr.bf16.mxu0 %v4596_v35 }
 0x35b   :  { %2242 = vmatpush1.bf16.msra.mxu0 %v4597_v12 }
 0x35c   :  { %2244 = vmatprep.subr.bf16.mxu0 %v4598_v53 }
 0x35f   :  { %2246 = vmatpush1.bf16.msra.mxu0 %v4599_v63 }
 0x360   :  { %2248 = vmatprep.subr.bf16.mxu0 %v4600_v33 }
 0x363   :  { %2250 = vmatpush1.bf16.msra.mxu0 %v4601_v47 }
 0x364   :  { %2252 = vmatprep.subr.bf16.mxu0 %v4602_v55 }
 0x367   :  { %2254 = vmatpush1.bf16.msra.mxu0 %v4603_v8 }
 0x368   :  { %2256 = vmatprep.subr.bf16.mxu0 %v4604_v37 }
 0x36b   :  { %2258 = vmatpush1.bf16.msra.mxu0 %v4605_v50 }
 0x36c   :  { %2260 = vmatprep.subr.bf16.mxu0 %v4606_v56 }
 0x36f   :  { %2262 = vmatpush1.bf16.msra.mxu0 %v4607_v42 }
 0x372   :  { %1312 = vmatmul.mubr.f32.vlgmr.msra.gmra.mrb[8].mxu0 %v3777_v49 }
 0x405   :  { %v1171_v44 = vpop.f32.mrb[6].mxu0  ;;  %v1242_v1 = vpop.f32.mrb[8].mxu1 }
 0x406   :  { %v1172_v39 = vadd.f32 %v1171_v44, %v3753_v20  ;;  %v1173_v16 = vpop.f32.mrb[7].mxu0  ;;  %v3947_v3 = vpop.f32.mrb[9].mxu1  ;;  %v1243_v54 = vadd.f32 %v1242_v1, %v3770_v58 }
 0x407   :  { %v1174_v46 = vadd.f32 %v1173_v16, %v3757_v23  ;;  %v1245_v55 = vadd.f32 %v3947_v3, %v3865_v36 }
 0x409   :  { %v1322_v14 = vcombine.low %v1172_v39, %v1174_v46 }
 0x40b   :  { %v1329_v26 = vrot.slane %v1322_v14, %v3762_v51 }
 0x40d   :  { %v1336_v31 = vrot.slane %v1329_v26, %v3762_v51 }
 0x40f   :  { %v1338_v41 = vadd.f32 %v1336_v31, %v1319_v32 }
 0x411   :  { %v1677_v0 = vmul.f32 -1.442695, %v1338_v41 }
 0x413   :  { %2348 = vpow2.f32 %v1677_v0 }
 0x41d   :  { %v2349_v22 = vpop.eup %2348 }
 0x41e   :  { %v1342_v21 = vadd.f32 1.0, %v2349_v22 }
 0x420   :  { %2350 = vrcp.f32 %v1342_v21 }
 0x42a   :  { %v2351_v20 = vpop.eup %2350 }
 0x42b   :  { %v1345_v9 = vmul.f32 %v2351_v20, %v1243_v54  ;;  %v1352_v23 = vrot.slane %v2351_v20, 1  ;;  %v1103_v54 = vrot.slane %v3890_v59, %v3702_v52 }
 0x42d   :  { %v1349_v11 = vadd.f32 %v1347_v7, %v1345_v9  ;;  %v1354_v18 = vsub.f32 1.0, %v1352_v23  ;;  %v1356_v51 = vmul.f32 %v1352_v23, %v3777_v49  ;;  %v1680_v7 = vld [vmem:[%s4016_s10] ss:$0 sm:$0xff] }
 0x42f   :  { %2352 = vtanh.f32 %v1349_v11 }
 0x439   :  { %v2353_v19 = vpop.eup %2352 }
 0x43a   :  { %v1355_v24 = vmul.f32 %v2353_v19, %v1354_v18  ;;  %v1681_v19 = vld [vmem:[#allocation5] ss:$0 sm:$0xff] }
 0x43c   :  { %v1357_v25 = vadd.f32 %v1356_v51, %v1355_v24 }
 0x43e   :  { %1423 = vmatmul.mubr.f32.vlgmr.msra.gmra.mrb[10].mxu1 %v1357_v25 }
 0x43f   :  { %2297 = vmatpush3.bf16.msra.mxu1 %v3775_v60  ;;  %1806 = vmatprep.mubr.msk.f32.mxu1 %vm2468_vm0, %v4284_v13  ;;  %v1526_v13 = vld [vmem:[%s4007_s1] sm:$0x3f] }
 0x440   :  { %2298 = vmatprep.subr.bf16.mxu1 %v4283_v34  ;;  %2354 = vtanh.f32 %v1526_v13  ;;  %v1529_v60 = vld [vmem:[%s4015_s9] sm:$0x7] }
 0x441   :  { %v1534_v49 = vrot.slane %v1529_v60, %v3702_v52 }
 0x443   :  { %2300 = vmatpush3.bf16.msra.mxu1 %v3783_v27  ;;  %v1538_v27 = vrot.slane %v1529_v60, %v3705_v2 }
 0x444   :  { %2301 = vmatprep.subr.bf16.mxu1 %v4283_v34 }
 0x445   :  { %v1313_v58 = vpop.f32.mrb[8].mxu0 }
 0x446   :  { %v1315_v29 = vpop.f32.mrb[9].mxu0  ;;  %v1314_v50 = vadd.f32 %v1313_v58, %v3862_v57 }
 0x447   :  { %2303 = vmatpush3.bf16.msra.mxu1 %v3791_v4  ;;  %v1542_v4 = vrot.slane %v1529_v60, %v3708_v62  ;;  %v1316_v14 = vadd.f32 %v1315_v29, %v3882_v15 }
 0x448   :  { %2304 = vmatprep.subr.bf16.mxu1 %v4283_v34 }
 0x44b   :  { %2306 = vmatpush3.bf16.msra.mxu1 %v3797_v6  ;;  %v1543_v6 = vcombine.low %v1534_v49, %v1538_v27 }
 0x44c   :  { %2307 = vmatprep.subr.bf16.mxu1 %v4283_v34 }
 0x44f   :  { %2309 = vmatpush3.bf16.msra.mxu1 %v3803_v28  ;;  %v1557_v28 = vrot.slane %v1542_v4, %v3718_v40 }
 0x450   :  { %2310 = vmatprep.subr.bf16.mxu1 %v4283_v34 }
 0x453   :  { %2312 = vmatpush3.bf16.msra.mxu1 %v3809_v38 }
 0x454   :  { %2313 = vmatprep.subr.bf16.mxu1 %v4283_v34 }
 0x457   :  { %2315 = vmatpush3.bf16.msra.mxu1 %v3815_v5  ;;  %v2355_v5 = vpop.eup %2354 }
 0x458   :  { %2316 = vmatprep.subr.bf16.mxu1 %v4283_v34  ;;  %v1550_v34 = vrot.slane %v1543_v6, %v3718_v40 }
 0x45a   :  { %v1558_v38 = vcombine.low %v1550_v34, %v1557_v28 }
 0x45b   :  { %2318 = vmatpush3.bf16.msra.mxu1 %v3821_v43 }
 0x45c   :  { %v1560_v43 = vmul.f32 %v2355_v5, %v1558_v38 }
 0x45e   :  { %1807 = vmatmul.mubr.f32.vlgmr.msra.gmra.mrb[12].mxu1 %v1357_v25  ;;  %v1562_v30 = vcombine.high %v1560_v43, %v1560_v43  ;;  %v1569_v17 = vrot.slane %v1560_v43, %v3718_v40 }
 0x460   :  { %v1576_v35 = vrot.slane %v1562_v30, %v3718_v40  ;;  %v1577_v12 = vcombine.high %v1569_v17, %v1569_v17  ;;  %v1582_v2 = vsel %vm1581_vm2, %v1569_v17, 0.0 }
 0x462   :  { %v1583_v62 = vsel %vm1581_vm2, %v1577_v12, 0.0  ;;  %v1586_v53 = vsel %vm1585_vm3, %v1576_v35, 0.0 }
 0x463   :  { %v1584_v63 = vadd.f32 %v1583_v62, %v1582_v2 }
 0x465   :  { %v1587_v33 = vadd.f32 %v1586_v53, %v1584_v63 }
 0x467   :  { %1588 = vadd.xlane.f32.xlu0 %v1587_v33 }
 0x511   :  { %v1424_v47 = vpop.f32.mrb[10].mxu1 }
 0x512   :  { %v1425_v8 = vadd.f32 %v1424_v47, %v3869_v45  ;;  %v1426_v37 = vpop.f32.mrb[11].mxu1 }
 0x513   :  { %v1427_v40 = vadd.f32 %v1426_v37, %v3873_v61 }
 0x514   :  { %v1499_v56 = vadd.f32 %v1425_v8, %v1245_v55 }
 0x515   :  { %v1500_v42 = vadd.f32 %v1427_v40, %v1314_v50 }
 0x516   :  { %v1678_v44 = vmul.f32 -1.442695, %v1499_v56 }
 0x517   :  { %v1679_v1 = vmul.f32 -1.442695, %v1500_v42 }
 0x518   :  { %2356 = vpow2.f32 %v1678_v44 }
 0x519   :  { %2358 = vpow2.f32 %v1679_v1 }
 0x522   :  { %v2357_v39 = vpop.eup %2356 }
 0x523   :  { %v1507_v16 = vadd.f32 1.0, %v2357_v39  ;;  %v2359_v46 = vpop.eup %2358 }
 0x524   :  { %v1508_v36 = vadd.f32 1.0, %v2359_v46 }
 0x525   :  { %2360 = vrcp.f32 %v1507_v16 }
 0x526   :  { %2362 = vrcp.f32 %v1508_v36 }
 0x52f   :  { %v2361_v3 = vpop.eup %2360 }
 0x530   :  { %v1513_v45 = vmul.f32 %v2361_v3, %v1316_v14  ;;  %v2363_v32 = vpop.eup %2362 }
 0x531   :  { %v1495_v26 = vpop.f32.mrb[12].mxu1  ;;  %v1516_v41 = vsub.f32 1.0, %v2363_v32  ;;  %v1518_v22 = vmul.f32 %v2363_v32, %v3890_v59  ;;  %v1589_v59 = vpop.xlane.xlu0 %1588 }
 0x532   :  { %v1496_v57 = vadd.f32 %v1495_v26, %v3887_v10  ;;  %v1808_v61 = vpop.f32.mrb[13].mxu1  ;;  %v1104_v10 = vsel %vm1099_vm4, %v1103_v54, 0.0 }
 0x534   :  { %v1514_v31 = vadd.f32 %v1513_v45, %v1496_v57 }
 0x536   :  { %2364 = vtanh.f32 %v1514_v31 }
 0x540   :  { %v2365_v0 = vpop.eup %2364 }
 0x541   :  { %v1517_v21 = vmul.f32 %v2365_v0, %v1516_v41 }
 0x543   :  { %v1519_v15 = vadd.f32 %v1518_v22, %v1517_v21 }
 0x545   :  { %v1524_v20 = vrot.slane %v1519_v15, %v3702_v52 }
 0x547   :  { %v1525_v9 = vsel %vm1520_vm5, %v1524_v20, %v1104_v10 }
 0x548   :  { %2366 = vtanh.f32 %v1525_v9 }
 0x552   :  { %v2367_v11 = vpop.eup %2366 }
 0x553   :  { %v1597_v23 = vmul.f32 %v2367_v11, %v1680_v7 }
 0x555   :  { %v1598_v18 = vsel %vm1581_vm2, %v1597_v23, 0.0 }
 0x556   :  { %1599 = vadd.xlane.f32.xlu0 %v1598_v18 }
 0x5e3   :  { %v1600_v24 = vpop.xlane.xlu0 %1599 }
 0x5e4   :  { %v1601_v51 = vadd.f32 %v1600_v24, %v1589_v59 }
 0x5e6   :  { %v1609_v25 = vadd.f32 %v1681_v19, %v1601_v51 }
 0x5e8   :  { %v1682_v48 = vmul.f32 -1.442695, %v1609_v25 }
 0x5ea   :  { %2368 = vpow2.f32 %v1682_v48 }
 0x5f4   :  { %v2369_v52 = vpop.eup %2368 }
 0x5f5   :  { %v1613_v58 = vadd.f32 1.0, %v2369_v52 }
 0x5f7   :  { %2370 = vrcp.f32 %v1613_v58 }
 0x601   :  { %v2371_v29 = vpop.eup %2370 }
 0x602   :  { %1617 = vst.msk [vmem:[%s4018_s12] sm:$0x3] %vm1616_vm6, %v2371_v29 }
 0x603   :  { %1622 = vsyncpa [#allocation7], 1 }
 0x604   :  { %1623 = vsyncpa [#allocation11], 1 }
 0x605   :  { %1624 = vsyncpa [#allocation8], 1 }
 0x606   :  { %1625 = vsyncmov [#allocation4] }
 0x609   :  { %s1626_s10 = vpop.sfrf %1625 }
 0x60a   :  { %p1683_p3 = scmp.ne.s32.totalorder %s1626_s10, 0 }
 0x60c   :  { %1630 = shalt.err (%p1683_p3)  }
 0x60d   :  { %1632 = vsyncmov [#allocation4 + $0x1] }
 0x610   :  { %s1633_s23 = vpop.sfrf %1632 }
 0x611   :  { %p1684_p4 = scmp.ne.s32.totalorder %s1633_s23, 0 }
 0x613   :  { %1637 = shalt.err (%p1684_p4)  }

</bundles_post_ra>
